<compile_context>
chip_gen: v6e
topology: v6e:2x2x1
jax: 0.10.0
libtpu: 0.0.40
codegen_flags: <defaults>
</compile_context>

<pallas_src>
import functools

import jax
import jax.numpy as jnp
from jax.experimental import pallas as pl
from jax.experimental.pallas import tpu as pltpu


# ----------------------------- config (synthetic, small) -----------------------------
class config:
    NUM_ANCHORS = 3
    ANCHOR_SCALES = (4.0, 8.0, 12.0)
    STRIDE = 4
    IMAGE_SIZE = 16
    FEATURES_HEIGHT = 4
    FEATURES_WIDTH = 4
    FEATURES_DEPTH = 4
    PRE_NMS_LIMIT = 64
    RPN_NMS_THRESHOLD = 0.7
    POST_NMS_ROIS_INFERENCE = 32
    POOL_SIZE_HEIGHT = 2
    POOL_SIZE_WIDTH = 2
    POOL_SIZE_DEPTH = 2
    NUM_CLASSES = 2
    MASK_SIZE = 4


def _round_up(v, m):
    return (v + m - 1) // m * m


def _vmem_limit(block_bytes):
    """Double-buffered working set + headroom, capped at 32 MiB so v7x
    (64 MiB physical VMEM per TensorCore) keeps double-buffering headroom."""
    return int(min(max(2 * block_bytes + (4 << 20), 8 << 20), 32 << 20))


_K_TILE_MAX = 2048   # K chunk size (multiple of 256) once K no longer fits one pass


# ----------------------------- generic lane-dense matmul kernel -----------------------------
def _matmul_bias_act_kernel(x_ref, w_ref, b_ref, o_ref, acc_ref, *, act, sig_lo, sig_hi):
    """One (M, K) tile of out = act(x @ w + b).  MXU matmul, f32 accumulate+epilogue."""
    k = pl.program_id(1)

    @pl.when(k == 0)
    def _():
        acc_ref[...] = jnp.zeros_like(acc_ref)

    acc_ref[...] += jnp.dot(x_ref[...], w_ref[...], preferred_element_type=jnp.float32)

    @pl.when(k == pl.num_programs(1) - 1)
    def _():
        y = acc_ref[...] + b_ref[...]           # epilogue stays in f32 vregs (v5e-friendly)
        if act == "relu":
            y = jnp.maximum(y, 0.0)
        elif act == "sigmoid":
            y = jax.nn.sigmoid(y)
        elif act == "sigmoid_cols":             # sigmoid only on lane range [sig_lo, sig_hi)
            col = jax.lax.broadcasted_iota(jnp.int32, y.shape, 1)
            y = jnp.where((col >= sig_lo) & (col < sig_hi), jax.nn.sigmoid(y), y)
        o_ref[...] = y.astype(o_ref.dtype)


def matmul_bias_act(x, w, b, act="none", sigmoid_cols=None, out_dtype=jnp.float32):
    """out = act(x @ w + b).  x:[M,K] w:[K,N] b:[N] -> [M,N] out_dtype.

    N is zero-padded to a multiple of 128 (lane-dense unmasked vst, full MXU
    columns).  K is padded only to the bf16 sublane granularity (16) — the K
    block either equals the full (padded) dim or is a 128-multiple chunk, so
    no 128-padding is needed and im2col read amplification is avoided.  Large
    K is grid-tiled ("arbitrary") into an f32 VMEM accumulator.  M tiling
    yields >= 2 "parallel" grid steps when M >= 256 (v7x: both TensorCores).
    """
    M, K = x.shape
    N = w.shape[1]
    Np = _round_up(N, 128)

    if K <= _K_TILE_MAX:
        Kp = _round_up(K, 16)
        tk = Kp
    else:
        Kp = _round_up(K, _K_TILE_MAX)
        tk = _K_TILE_MAX

    if M >= 256:
        tm = min(512, _round_up((M + 1) // 2, 16))
    else:
        tm = _round_up(M, 16)
    Mp = _round_up(M, tm)

    xp = jnp.pad(x.astype(jnp.bfloat16), ((0, Mp - M), (0, Kp - K)))
    wp = jnp.pad(w, ((0, Kp - K), (0, Np - N))).astype(jnp.bfloat16)
    bp = jnp.pad(b.reshape(1, N), ((0, 0), (0, Np - N))).astype(jnp.float32)

    act_mode = "sigmoid_cols" if sigmoid_cols is not None else act
    sig_lo, sig_hi = sigmoid_cols if sigmoid_cols is not None else (0, 0)

    out_isize = jnp.dtype(out_dtype).itemsize
    n_trans = Mp * Np if act_mode in ("sigmoid", "sigmoid_cols") else 0
    cost = pl.CostEstimate(
        flops=2 * Mp * Kp * Np,
        transcendentals=n_trans,
        bytes_accessed=2 * (Mp * Kp + Kp * Np) + 4 * Np + out_isize * Mp * Np,
    )
    block_bytes = (tm * tk * 2 + tk * Np * 2 + Np * 4
                   + tm * Np * out_isize + tm * Np * 4)

    out = pl.pallas_call(
        functools.partial(_matmul_bias_act_kernel, act=act_mode,
                          sig_lo=sig_lo, sig_hi=sig_hi),
        out_shape=jax.ShapeDtypeStruct((Mp, Np), out_dtype),
        grid=(Mp // tm, Kp // tk),
        in_specs=[
            pl.BlockSpec((tm, tk), lambda i, k: (i, k)),
            # NOTE: block index for w only varies along k (re-DMA skipped when
            # it doesn't change); buffer-count reduction left to the compiler.
            pl.BlockSpec((tk, Np), lambda i, k: (k, 0)),
            pl.BlockSpec((1, Np), lambda i, k: (0, 0)),
        ],
        out_specs=pl.BlockSpec((tm, Np), lambda i, k: (i, 0)),
        scratch_shapes=[pltpu.VMEM((tm, Np), jnp.float32)],
        compiler_params=pltpu.CompilerParams(
            dimension_semantics=("parallel", "arbitrary"),
            vmem_limit_bytes=_vmem_limit(block_bytes),
        ),
        cost_estimate=cost,
    )(xp, wp, bp)

    if Mp != M or Np != N:
        out = out[:M, :N]
    return out


# ----------------------------- conv3d via im2col + Pallas matmul -----------------------------
def _im2col3d_cl(x, k, stride, pad):
    """Channels-last im2col.  x:[B,H,W,D,C] -> cols:[B*OH*OW*OD, k^3*C]."""
    # TODO(synk): at real CT-volume sizes move im2col inside the conv kernel
    # (halo'd VMEM tile + 27 shifted matmuls into an f32 accumulator) — the
    # materialized cols array is a 27x HBM read amplification at scale.
    B, H, W, D, C = x.shape
    xp = jnp.pad(x, ((0, 0), (pad, pad), (pad, pad), (pad, pad), (0, 0)))
    OH = (H + 2 * pad - k) // stride + 1
    OW = (W + 2 * pad - k) // stride + 1
    OD = (D + 2 * pad - k) // stride + 1
    patches = []
    for kh in range(k):
        for kw in range(k):
            for kd in range(k):
                patches.append(xp[:,
                                  kh:kh + stride * OH:stride,
                                  kw:kw + stride * OW:stride,
                                  kd:kd + stride * OD:stride, :])
    cols = jnp.concatenate(patches, axis=-1)                  # [B,OH,OW,OD,k^3*C]
    return cols.reshape(B * OH * OW * OD, k * k * k * C), (OH, OW, OD)


def conv3d_relu(x, w, b, stride, pad):
    """x:[B,H,W,D,Cin] channels-last, w:[Cout,Cin,k,k,k] -> [B,OH,OW,OD,Cout] bf16, ReLU."""
    B = x.shape[0]
    Cin = x.shape[-1]
    Cout, k = w.shape[0], w.shape[2]
    cols, (OH, OW, OD) = _im2col3d_cl(x.astype(jnp.bfloat16), k, stride, pad)
    wm = w.transpose(2, 3, 4, 1, 0).reshape(k * k * k * Cin, Cout)   # rows = (kh,kw,kd,Cin)
    y = matmul_bias_act(cols, wm, b, act="relu", out_dtype=jnp.bfloat16)
    return y.reshape(B, OH, OW, OD, Cout)


# ----------------------------- fused RPN head + proposal decode -----------------------------
def _rpn_proposal_kernel(wc_ref, ws_ref, bc_ref, bs_ref, ac_ref, as_ref, xt_ref, out_ref):
    """Fused 1x1x1 RPN conv (MXU, transposed layout) + vectorized box decode + sigmoid.

    Row layout (per anchor a, rows a*8 + r):
      center-delta block (wc/bc):  r=0..5 -> dy,dx,dz,dy,dx,dz ; r=6 -> logit ; r=7 pad
      size-delta   block (ws/bs):  r=0..5 -> dh,dw,dp,dh,dw,dp ; r=6,7 pad
      anchors: ac rows = cy,cx,cz,cy,cx,cz,0,0 ; as rows = h,w,p,h,w,p,0,0
    Output rows a*8 + {0..5} = decoded box (y1,x1,z1,y2,x2,z2), row a*8+6 = score.
    All decode ops are whole-block vector ops (no single-sublane slices/concats).
    """
    x = xt_ref[...]
    yc = jnp.dot(wc_ref[...], x, preferred_element_type=jnp.float32) + bc_ref[...]
    ys = jnp.dot(ws_ref[...], x, preferred_element_type=jnp.float32) + bs_ref[...]
    ac = ac_ref[...]
    asz = as_ref[...]
    center = ac + yc * asz                      # rows 0..5: refined center component
    size = asz * jnp.exp(ys)                    # rows 0..5: refined size component (EUP)
    rowmod = jax.lax.broadcasted_iota(jnp.int32, center.shape, 0) % 8
    box = center + jnp.where(rowmod < 3, -0.5, 0.5) * size
    out_ref[...] = jnp.where(rowmod == 6, jax.nn.sigmoid(yc), box)


def rpn_proposal(fm, rpn_w, rpn_b, anchors):
    """Fused RPN head + anchor decode + sigmoid scores in a single gridded pallas_call.

    fm: [B,FH,FW,FD,C] channels-last (bf16).  Returns boxes [B, P*NA, 6], scores [B, P*NA].
    """
    B, FH, FW, FD, C = fm.shape
    NA = config.NUM_ANCHORS
    NB = NA * 8
    NBp = _round_up(NB, 16)                     # bf16 sublane packing for the weight blocks
    P = FH * FW * FD
    M = B * P
    Kp = _round_up(C, 16)

    tl = min(1024, _round_up(M, 128))           # lane tile; grid over voxels -> both v7x TCs
    Mp = _round_up(M, tl)

    # Transposed activations: channels on sublanes, flat voxel index on lanes (lane-dense).
    xt = jnp.pad(fm.reshape(M, C).T.astype(jnp.bfloat16), ((0, Kp - C), (0, Mp - M)))

    # Repack weights/bias into center/size blocks of 8 rows per anchor (see kernel docstring).
    w7 = rpn_w.T.reshape(NA, 7, C)              # component order dy,dx,dz,dh,dw,dp,logit
    b7 = rpn_b.reshape(NA, 7)
    zw1 = jnp.zeros((NA, 1, C), w7.dtype)
    zb1 = jnp.zeros((NA, 1), b7.dtype)
    wc = jnp.concatenate([w7[:, 0:3], w7[:, 0:3], w7[:, 6:7], zw1], axis=1).reshape(NB, C)
    ws = jnp.concatenate([w7[:, 3:6], w7[:, 3:6], zw1, zw1], axis=1).reshape(NB, C)
    wc = jnp.pad(wc, ((0, NBp - NB), (0, Kp - C))).astype(jnp.bfloat16)
    ws = jnp.pad(ws, ((0, NBp - NB), (0, Kp - C))).astype(jnp.bfloat16)
    bc = jnp.concatenate([b7[:, 0:3], b7[:, 0:3], b7[:, 6:7], zb1], axis=1).reshape(NB, 1)
    bs = jnp.concatenate([b7[:, 3:6], b7[:, 3:6], zb1, zb1], axis=1).reshape(NB, 1)
    bc = jnp.pad(bc, ((0, NBp - NB), (0, 0))).astype(jnp.float32)
    bs = jnp.pad(bs, ((0, NBp - NB), (0, 0))).astype(jnp.float32)

    # Anchors pre-split into centers / sizes (constant), rows matching the weight packing.
    anc6 = anchors.reshape(P, NA, 6).transpose(1, 2, 0)                   # [NA, 6, P]
    a1, a2 = anc6[:, 0:3], anc6[:, 3:6]
    ctr, sz = 0.5 * (a1 + a2), a2 - a1
    za = jnp.zeros((NA, 2, P), jnp.float32)
    ac = jnp.concatenate([ctr, ctr, za], axis=1).reshape(NB, P)
    asz = jnp.concatenate([sz, sz, za], axis=1).reshape(NB, P)
    ac = jnp.pad(jnp.tile(ac, (1, B)), ((0, NBp - NB), (0, Mp - M))).astype(jnp.float32)
    asz = jnp.pad(jnp.tile(asz, (1, B)), ((0, NBp - NB), (0, Mp - M))).astype(jnp.float32)

    cost = pl.CostEstimate(
        flops=2 * (2 * NBp) * Kp * Mp,
        transcendentals=2 * NBp * Mp,
        bytes_accessed=2 * (2 * NBp * Kp + Kp * Mp) + 4 * (2 * NBp + 3 * NBp * Mp),
    )
    block_bytes = (2 * NBp * Kp * 2 + 2 * NBp * 4 + 2 * NBp * tl * 4
                   + Kp * tl * 2 + NBp * tl * 4)

    out_t = pl.pallas_call(
        _rpn_proposal_kernel,
        out_shape=jax.ShapeDtypeStruct((NBp, Mp), jnp.float32),
        grid=(Mp // tl,),
        in_specs=[
            pl.BlockSpec((NBp, Kp), lambda i: (0, 0)),   # wc (center-delta weights)
            pl.BlockSpec((NBp, Kp), lambda i: (0, 0)),   # ws (size-delta weights)
            pl.BlockSpec((NBp, 1), lambda i: (0, 0)),    # bc
            pl.BlockSpec((NBp, 1), lambda i: (0, 0)),    # bs
            pl.BlockSpec((NBp, tl), lambda i: (0, i)),   # anchor centers
            pl.BlockSpec((NBp, tl), lambda i: (0, i)),   # anchor sizes
            pl.BlockSpec((Kp, tl), lambda i: (0, i)),    # activations (transposed)
        ],
        out_specs=pl.BlockSpec((NBp, tl), lambda i: (0, i)),
        compiler_params=pltpu.CompilerParams(
            dimension_semantics=("parallel",),
            vmem_limit_bytes=_vmem_limit(block_bytes),
        ),
        cost_estimate=cost,
    )(wc, ws, bc, bs, ac, asz, xt)

    out = out_t[:NB, :M].reshape(NA, 8, B, P)
    boxes = out[:, 0:6].transpose(2, 3, 0, 1).reshape(B, P * NA, 6)
    scores = out[:, 6].transpose(1, 2, 0).reshape(B, P * NA)
    return boxes, scores


# ----------------------------- model pieces -----------------------------
def generate_anchors(scales, stride, fh, fw, fd):
    cy = (jnp.arange(fh, dtype=jnp.float32) + 0.5) * stride
    cx = (jnp.arange(fw, dtype=jnp.float32) + 0.5) * stride
    cz = (jnp.arange(fd, dtype=jnp.float32) + 0.5) * stride
    gy, gx, gz = jnp.meshgrid(cy, cx, cz, indexing="ij")
    centers = jnp.stack([gy, gx, gz], axis=-1).reshape(-1, 1, 3)
    half = jnp.asarray(scales, dtype=jnp.float32).reshape(1, -1, 1) / 2.0
    half = jnp.broadcast_to(half, (centers.shape[0], len(scales), 3))
    return jnp.concatenate([centers - half, centers + half], axis=-1).reshape(-1, 6)


def roi_align(feature_map, boxes, box_indices, ph, pw, pd, image_size):
    # TODO(synk): at real ROI counts replace with a scalar-prefetch Pallas DMA gather
    # fused with fc1 (trilinear ROI-Align); nearest-neighbor sampling in plain JAX here.
    B, FH, FW, FD, C = feature_map.shape

    def sample_one(box, bidx):
        y1, x1, z1, y2, x2, z2 = box
        ys = y1 + (jnp.arange(ph, dtype=jnp.float32) + 0.5) * (y2 - y1) / ph
        xs = x1 + (jnp.arange(pw, dtype=jnp.float32) + 0.5) * (x2 - x1) / pw
        zs = z1 + (jnp.arange(pd, dtype=jnp.float32) + 0.5) * (z2 - z1) / pd
        fy = jnp.clip(jnp.floor(ys / image_size * FH).astype(jnp.int32), 0, FH - 1)
        fx = jnp.clip(jnp.floor(xs / image_size * FW).astype(jnp.int32), 0, FW - 1)
        fz = jnp.clip(jnp.floor(zs / image_size * FD).astype(jnp.int32), 0, FD - 1)
        fmap = feature_map[bidx]                               # [FH, FW, FD, C]
        return fmap[fy[:, None, None], fx[None, :, None], fz[None, None, :], :]

    return jax.vmap(sample_one)(boxes, box_indices)            # [R, ph, pw, pd, C] (bf16)


def mrcnn_head(rois, params):
    """fc1 (+ReLU, bf16 out), then ONE fused lane-dense matmul for cls / deltas / mask."""
    R = rois.shape[0]
    flat = rois.reshape(R, -1)                                 # channels-last flatten (bf16)
    h = matmul_bias_act(flat, params["fc1_w"], params["fc1_b"], act="relu",
                        out_dtype=jnp.bfloat16)

    n_cls = config.NUM_CLASSES
    n_delta = config.NUM_CLASSES * 6
    n_mask = config.NUM_CLASSES * config.MASK_SIZE ** 3
    w_all = jnp.concatenate([params["cls_w"], params["delta_w"], params["mask_w"]], axis=1)
    b_all = jnp.concatenate([params["cls_b"], params["delta_b"], params["mask_b"]], axis=0)
    out = matmul_bias_act(h, w_all, b_all,
                          sigmoid_cols=(n_cls + n_delta, n_cls + n_delta + n_mask))
    cls = out[:, :n_cls]
    deltas = out[:, n_cls:n_cls + n_delta].reshape(R, config.NUM_CLASSES, 6)
    mask = out[:, n_cls + n_delta:].reshape(R, config.NUM_CLASSES,
                                            config.MASK_SIZE, config.MASK_SIZE,
                                            config.MASK_SIZE)
    return cls, deltas, mask


# ----------------------------- parameters -----------------------------
def init_params(key):
    ks = jax.random.split(key, 8)

    def w(k, shape, scale=0.05):
        return scale * jax.random.normal(k, shape, dtype=jnp.float32)

    roi_feat = 64 * config.POOL_SIZE_HEIGHT * config.POOL_SIZE_WIDTH * config.POOL_SIZE_DEPTH
    return {
        # base_net (simplified UNet encoder; TODO(synk): original UNet with skip
        # connections / decoder is not defined in the reference source)
        "conv1_w": w(ks[0], (16, 1, 3, 3, 3)),
        "conv1_b": jnp.zeros((16,), jnp.float32),
        "conv2_w": w(ks[1], (64, 16, 3, 3, 3)),
        "conv2_b": jnp.zeros((64,), jnp.float32),
        # rpn head: 1x1x1 conv -> NUM_ANCHORS * (6 deltas + 1 logit)
        "rpn_w": w(ks[2], (64, config.NUM_ANCHORS * 7)),
        "rpn_b": jnp.zeros((config.NUM_ANCHORS * 7,), jnp.float32),
        # mrcnn head (in_channel = 64); fc1 consumes the channels-last ROI flatten
        "fc1_w": w(ks[3], (roi_feat, 128)),
        "fc1_b": jnp.zeros((128,), jnp.float32),
        "cls_w": w(ks[4], (128, config.NUM_CLASSES)),
        "cls_b": jnp.zeros((config.NUM_CLASSES,), jnp.float32),
        "delta_w": w(ks[5], (128, config.NUM_CLASSES * 6)),
        "delta_b": jnp.zeros((config.NUM_CLASSES * 6,), jnp.float32),
        "mask_w": w(ks[6], (128, config.NUM_CLASSES * config.MASK_SIZE ** 3)),
        "mask_b": jnp.zeros((config.NUM_CLASSES * config.MASK_SIZE ** 3,), jnp.float32),
    }


# ----------------------------- forward (phase='test' path) -----------------------------
def lung_net_forward(params, x):
    """x: [B, C, H, W, D] float32 (PyTorch NCDHW).  Inference path only."""
    anchors = generate_anchors(config.ANCHOR_SCALES, config.STRIDE,
                               config.FEATURES_HEIGHT, config.FEATURES_WIDTH,
                               config.FEATURES_DEPTH)

    # Single layout conversion at the model boundary; everything downstream is
    # channels-last so Cout sits on lanes for the Pallas matmuls.
    xcl = jnp.transpose(x, (0, 2, 3, 4, 1))
    fm = conv3d_relu(xcl, params["conv1_w"], params["conv1_b"], stride=2, pad=1)  # [B,8,8,8,16] bf16
    fm = conv3d_relu(fm, params["conv2_w"], params["conv2_b"], stride=2, pad=1)   # [B,4,4,4,64] bf16

    # Fused RPN head + proposal decode + sigmoid scores (one gridded pallas_call).
    boxes, scores = rpn_proposal(fm, params["rpn_w"], params["rpn_b"], anchors)

    # TODO(synk): 3-D NMS has no clean Pallas equivalent; using score top-k instead.
    B = fm.shape[0]
    k = min(config.POST_NMS_ROIS_INFERENCE, scores.shape[1])
    top_scores, idx = jax.lax.top_k(scores, k)
    top_boxes = jnp.take_along_axis(boxes, idx[..., None], axis=1)
    top_boxes = jnp.clip(top_boxes, 0.0, float(config.IMAGE_SIZE))   # clip to image volume
    batch_proposals = top_boxes.reshape(B * k, 6)
    batch_scores = top_scores.reshape(B * k)
    batch_indices = jnp.repeat(jnp.arange(B, dtype=jnp.int32), k)

    rois = roi_align(fm, batch_proposals, batch_indices,
                     config.POOL_SIZE_HEIGHT, config.POOL_SIZE_WIDTH,
                     config.POOL_SIZE_DEPTH, config.IMAGE_SIZE)
    predict_mrcnn_cls, predict_mrcnn_deltas, predict_mask = mrcnn_head(rois, params)

    outputs = {}
    # TODO(synk): train branch (MrcnnTarget / RpnTarget / five losses) needs GT matching +
    # NMS which have no clean Pallas equivalent; only the inference path is implemented.
    aux = {
        "feature_map": jnp.transpose(fm, (0, 4, 1, 2, 3)).astype(jnp.float32),  # NCDHW boundary
        "proposals": batch_proposals,
        "scores": batch_scores,
        "indices": batch_indices,
        "mrcnn_cls": predict_mrcnn_cls,
        "mrcnn_deltas": predict_mrcnn_deltas,
        "mrcnn_mask": predict_mask,
    }
    return outputs, aux


# ----------------------------- main -----------------------------
if __name__ == "__main__":
    key = jax.random.PRNGKey(0)
    pkey, xkey = jax.random.split(key)
    params = init_params(pkey)
    x = jax.random.normal(xkey, (2, 1, 16, 16, 16), dtype=jnp.float32)

    forward = jax.jit(lung_net_forward)
    outputs, aux = forward(params, x)
    jax.block_until_ready(aux)

    assert aux["feature_map"].shape == (2, 64, 4, 4, 4)
    assert aux["proposals"].shape == (2 * config.POST_NMS_ROIS_INFERENCE, 6)
    assert aux["mrcnn_cls"].shape == (2 * config.POST_NMS_ROIS_INFERENCE, config.NUM_CLASSES)
    assert aux["mrcnn_mask"].shape == (2 * config.POST_NMS_ROIS_INFERENCE, config.NUM_CLASSES,
                                       config.MASK_SIZE, config.MASK_SIZE, config.MASK_SIZE)
    print("KERNEL_OK")
</pallas_src>

<mosaic_0001>
module attributes {stable_mosaic.version = 11 : i64} {
  func.func @_matmul_bias_act_kernel(%arg0: i32, %arg1: i32, %arg2: memref<512x32xbf16, #tpu.memory_space<vmem>>, %arg3: memref<32x128xbf16, #tpu.memory_space<vmem>>, %arg4: memref<1x128xf32, #tpu.memory_space<vmem>>, %arg5: memref<512x128xbf16, #tpu.memory_space<vmem>>, %arg6: memref<512x128xf32, #tpu.memory_space<vmem>>) attributes {dimension_semantics = [#tpu.dimension_semantics<parallel>, #tpu.dimension_semantics<arbitrary>], iteration_bounds = array<i64: 2, 1>, scalar_prefetch = 0 : i64, scratch_operands = 1 : i64, tpu.core_type = #tpu.core_type<tc>, window_params = [{transform_indices = @transform_0, window_bounds = array<i64: 512, 32>}, {transform_indices = @transform_1, window_bounds = array<i64: 32, 128>}, {pipeline_mode = #tpu.pipeline_mode<synchronous>, transform_indices = @transform_2, window_bounds = array<i64: 1, 128>}, {transform_indices = @transform_3, window_bounds = array<i64: 512, 128>}]} {
    %c0_i32 = arith.constant 0 : i32
    %0 = arith.cmpi eq, %arg1, %c0_i32 : i32
    %1 = arith.extui %0 : i1 to i32
    %c0_i32_0 = arith.constant 0 : i32
    %2 = arith.cmpi ne, %1, %c0_i32_0 : i32
    scf.if %2 {
      %cst_10 = arith.constant 0.000000e+00 : f32
      %12 = vector.broadcast %cst_10 : f32 to vector<512x128xf32>
      %c0_11 = arith.constant 0 : index
      %c0_12 = arith.constant 0 : index
      %13 = vector.load %arg6[%c0_11, %c0_12] : memref<512x128xf32, #tpu.memory_space<vmem>>, vector<512x128xf32>
      tpu.vector_store %arg6[%c0_11, %c0_12], %12 {strides = array<i32>} : memref<512x128xf32, #tpu.memory_space<vmem>>, vector<512x128xf32>,
    } else {
    }
    %c0 = arith.constant 0 : index
    %c0_1 = arith.constant 0 : index
    %3 = vector.load %arg6[%c0, %c0_1] : memref<512x128xf32, #tpu.memory_space<vmem>>, vector<512x128xf32>
    %c0_2 = arith.constant 0 : index
    %c0_3 = arith.constant 0 : index
    %4 = vector.load %arg2[%c0_2, %c0_3] : memref<512x32xbf16, #tpu.memory_space<vmem>>, vector<512x32xbf16>
    %c0_4 = arith.constant 0 : index
    %c0_5 = arith.constant 0 : index
    %5 = vector.load %arg3[%c0_4, %c0_5] : memref<32x128xbf16, #tpu.memory_space<vmem>>, vector<32x128xbf16>
    %cst = arith.constant dense<0.000000e+00> : vector<512x128xf32>
    %6 = tpu.matmul %4, %5, %cst {dimension_numbers = #tpu.dot_dimension_numbers<[1], [0], [0], [1], [0, 0, 1, 1], [], []>} : vector<512x32xbf16>, vector<32x128xbf16>, vector<512x128xf32> -> vector<512x128xf32>
    %7 = arith.addf %3, %6 : vector<512x128xf32>
    %c0_6 = arith.constant 0 : index
    %c0_7 = arith.constant 0 : index
    %8 = vector.load %arg6[%c0_6, %c0_7] : memref<512x128xf32, #tpu.memory_space<vmem>>, vector<512x128xf32>
    tpu.vector_store %arg6[%c0_6, %c0_7], %7 {strides = array<i32>} : memref<512x128xf32, #tpu.memory_space<vmem>>, vector<512x128xf32>,
    %c0_i32_8 = arith.constant 0 : i32
    %9 = arith.cmpi eq, %arg1, %c0_i32_8 : i32
    %10 = arith.extui %9 : i1 to i32
    %c0_i32_9 = arith.constant 0 : i32
    %11 = arith.cmpi ne, %10, %c0_i32_9 : i32
    scf.if %11 {
      %c0_10 = arith.constant 0 : index
      %c0_11 = arith.constant 0 : index
      %12 = vector.load %arg6[%c0_10, %c0_11] : memref<512x128xf32, #tpu.memory_space<vmem>>, vector<512x128xf32>
      %c0_12 = arith.constant 0 : index
      %c0_13 = arith.constant 0 : index
      %13 = vector.load %arg4[%c0_12, %c0_13] : memref<1x128xf32, #tpu.memory_space<vmem>>, vector<1x128xf32>
      %14 = vector.broadcast %13 : vector<1x128xf32> to vector<512x128xf32>
      %15 = arith.addf %12, %14 : vector<512x128xf32>
      %cst_14 = arith.constant 0.000000e+00 : f32
      %16 = vector.broadcast %cst_14 : f32 to vector<512x128xf32>
      %17 = arith.maximumf %15, %16 : vector<512x128xf32>
      %18 = arith.truncf %17 : vector<512x128xf32> to vector<512x128xbf16>
      %c0_15 = arith.constant 0 : index
      %c0_16 = arith.constant 0 : index
      %19 = vector.load %arg5[%c0_15, %c0_16] : memref<512x128xbf16, #tpu.memory_space<vmem>>, vector<512x128xbf16>
      tpu.vector_store %arg5[%c0_15, %c0_16], %18 {strides = array<i32>} : memref<512x128xbf16, #tpu.memory_space<vmem>>, vector<512x128xbf16>,
    } else {
    }
    return
  }
  func.func @transform_0(%arg0: i32, %arg1: i32) -> (i32, i32) {
    %c0_i32 = arith.constant 0 : i32
    return %arg0, %arg1 : i32, i32
  }
  func.func @transform_1(%arg0: i32, %arg1: i32) -> (i32, i32) {
    %c0_i32 = arith.constant 0 : i32
    %c0_i32_0 = arith.constant 0 : i32
    return %arg1, %c0_i32 : i32, i32
  }
  func.func @transform_2(%arg0: i32, %arg1: i32) -> (i32, i32) {
    %c0_i32 = arith.constant 0 : i32
    %c0_i32_0 = arith.constant 0 : i32
    %c0_i32_1 = arith.constant 0 : i32
    return %c0_i32, %c0_i32_0 : i32, i32
  }
  func.func @transform_3(%arg0: i32, %arg1: i32) -> (i32, i32) {
    %c0_i32 = arith.constant 0 : i32
    %c0_i32_0 = arith.constant 0 : i32
    return %arg0, %c0_i32 : i32, i32
  }
}

module attributes {stable_mosaic.version = 11 : i64} {
  func.func @_matmul_bias_act_kernel(%arg0: i32, %arg1: i32, %arg2: memref<128x432xbf16, #tpu.memory_space<vmem>>, %arg3: memref<432x128xbf16, #tpu.memory_space<vmem>>, %arg4: memref<1x128xf32, #tpu.memory_space<vmem>>, %arg5: memref<128x128xbf16, #tpu.memory_space<vmem>>, %arg6: memref<128x128xf32, #tpu.memory_space<vmem>>) attributes {dimension_semantics = [#tpu.dimension_semantics<parallel>, #tpu.dimension_semantics<arbitrary>], iteration_bounds = array<i64: 1, 1>, scalar_prefetch = 0 : i64, scratch_operands = 1 : i64, tpu.core_type = #tpu.core_type<tc>, window_params = [{transform_indices = @transform_0, window_bounds = array<i64: 128, 432>}, {transform_indices = @transform_1, window_bounds = array<i64: 432, 128>}, {pipeline_mode = #tpu.pipeline_mode<synchronous>, transform_indices = @transform_2, window_bounds = array<i64: 1, 128>}, {transform_indices = @transform_3, window_bounds = array<i64: 128, 128>}]} {
    %c0_i32 = arith.constant 0 : i32
    %0 = arith.cmpi eq, %arg1, %c0_i32 : i32
    %1 = arith.extui %0 : i1 to i32
    %c0_i32_0 = arith.constant 0 : i32
    %2 = arith.cmpi ne, %1, %c0_i32_0 : i32
    scf.if %2 {
      %cst_10 = arith.constant 0.000000e+00 : f32
      %12 = vector.broadcast %cst_10 : f32 to vector<128x128xf32>
      %c0_11 = arith.constant 0 : index
      %c0_12 = arith.constant 0 : index
      %13 = vector.load %arg6[%c0_11, %c0_12] : memref<128x128xf32, #tpu.memory_space<vmem>>, vector<128x128xf32>
      tpu.vector_store %arg6[%c0_11, %c0_12], %12 {strides = array<i32>} : memref<128x128xf32, #tpu.memory_space<vmem>>, vector<128x128xf32>,
    } else {
    }
    %c0 = arith.constant 0 : index
    %c0_1 = arith.constant 0 : index
    %3 = vector.load %arg6[%c0, %c0_1] : memref<128x128xf32, #tpu.memory_space<vmem>>, vector<128x128xf32>
    %c0_2 = arith.constant 0 : index
    %c0_3 = arith.constant 0 : index
    %4 = vector.load %arg2[%c0_2, %c0_3] : memref<128x432xbf16, #tpu.memory_space<vmem>>, vector<128x432xbf16>
    %c0_4 = arith.constant 0 : index
    %c0_5 = arith.constant 0 : index
    %5 = vector.load %arg3[%c0_4, %c0_5] : memref<432x128xbf16, #tpu.memory_space<vmem>>, vector<432x128xbf16>
    %cst = arith.constant dense<0.000000e+00> : vector<128x128xf32>
    %6 = tpu.matmul %4, %5, %cst {dimension_numbers = #tpu.dot_dimension_numbers<[1], [0], [0], [1], [0, 0, 1, 1], [], []>} : vector<128x432xbf16>, vector<432x128xbf16>, vector<128x128xf32> -> vector<128x128xf32>
    %7 = arith.addf %3, %6 : vector<128x128xf32>
    %c0_6 = arith.constant 0 : index
    %c0_7 = arith.constant 0 : index
    %8 = vector.load %arg6[%c0_6, %c0_7] : memref<128x128xf32, #tpu.memory_space<vmem>>, vector<128x128xf32>
    tpu.vector_store %arg6[%c0_6, %c0_7], %7 {strides = array<i32>} : memref<128x128xf32, #tpu.memory_space<vmem>>, vector<128x128xf32>,
    %c0_i32_8 = arith.constant 0 : i32
    %9 = arith.cmpi eq, %arg1, %c0_i32_8 : i32
    %10 = arith.extui %9 : i1 to i32
    %c0_i32_9 = arith.constant 0 : i32
    %11 = arith.cmpi ne, %10, %c0_i32_9 : i32
    scf.if %11 {
      %c0_10 = arith.constant 0 : index
      %c0_11 = arith.constant 0 : index
      %12 = vector.load %arg6[%c0_10, %c0_11] : memref<128x128xf32, #tpu.memory_space<vmem>>, vector<128x128xf32>
      %c0_12 = arith.constant 0 : index
      %c0_13 = arith.constant 0 : index
      %13 = vector.load %arg4[%c0_12, %c0_13] : memref<1x128xf32, #tpu.memory_space<vmem>>, vector<1x128xf32>
      %14 = vector.broadcast %13 : vector<1x128xf32> to vector<128x128xf32>
      %15 = arith.addf %12, %14 : vector<128x128xf32>
      %cst_14 = arith.constant 0.000000e+00 : f32
      %16 = vector.broadcast %cst_14 : f32 to vector<128x128xf32>
      %17 = arith.maximumf %15, %16 : vector<128x128xf32>
      %18 = arith.truncf %17 : vector<128x128xf32> to vector<128x128xbf16>
      %c0_15 = arith.constant 0 : index
      %c0_16 = arith.constant 0 : index
      %19 = vector.load %arg5[%c0_15, %c0_16] : memref<128x128xbf16, #tpu.memory_space<vmem>>, vector<128x128xbf16>
      tpu.vector_store %arg5[%c0_15, %c0_16], %18 {strides = array<i32>} : memref<128x128xbf16, #tpu.memory_space<vmem>>, vector<128x128xbf16>,
    } else {
    }
    return
  }
  func.func @transform_0(%arg0: i32, %arg1: i32) -> (i32, i32) {
    %c0_i32 = arith.constant 0 : i32
    return %arg0, %arg1 : i32, i32
  }
  func.func @transform_1(%arg0: i32, %arg1: i32) -> (i32, i32) {
    %c0_i32 = arith.constant 0 : i32
    %c0_i32_0 = arith.constant 0 : i32
    return %arg1, %c0_i32 : i32, i32
  }
  func.func @transform_2(%arg0: i32, %arg1: i32) -> (i32, i32) {
    %c0_i32 = arith.constant 0 : i32
    %c0_i32_0 = arith.constant 0 : i32
    %c0_i32_1 = arith.constant 0 : i32
    return %c0_i32, %c0_i32_0 : i32, i32
  }
  func.func @transform_3(%arg0: i32, %arg1: i32) -> (i32, i32) {
    %c0_i32 = arith.constant 0 : i32
    %c0_i32_0 = arith.constant 0 : i32
    return %arg0, %c0_i32 : i32, i32
  }
}

module attributes {stable_mosaic.version = 11 : i64} {
  func.func @_rpn_proposal_kernel(%arg0: i32, %arg1: memref<32x64xbf16, #tpu.memory_space<vmem>>, %arg2: memref<32x64xbf16, #tpu.memory_space<vmem>>, %arg3: memref<32x1xf32, #tpu.memory_space<vmem>>, %arg4: memref<32x1xf32, #tpu.memory_space<vmem>>, %arg5: memref<32x128xf32, #tpu.memory_space<vmem>>, %arg6: memref<32x128xf32, #tpu.memory_space<vmem>>, %arg7: memref<64x128xbf16, #tpu.memory_space<vmem>>, %arg8: memref<32x128xf32, #tpu.memory_space<vmem>>) attributes {dimension_semantics = [#tpu.dimension_semantics<parallel>], iteration_bounds = array<i64: 1>, scalar_prefetch = 0 : i64, scratch_operands = 0 : i64, tpu.core_type = #tpu.core_type<tc>, window_params = [{pipeline_mode = #tpu.pipeline_mode<synchronous>, transform_indices = @transform_0, window_bounds = array<i64: 32, 64>}, {pipeline_mode = #tpu.pipeline_mode<synchronous>, transform_indices = @transform_1, window_bounds = array<i64: 32, 64>}, {pipeline_mode = #tpu.pipeline_mode<synchronous>, transform_indices = @transform_2, window_bounds = array<i64: 32, 1>}, {pipeline_mode = #tpu.pipeline_mode<synchronous>, transform_indices = @transform_3, window_bounds = array<i64: 32, 1>}, {transform_indices = @transform_4, window_bounds = array<i64: 32, 128>}, {transform_indices = @transform_5, window_bounds = array<i64: 32, 128>}, {transform_indices = @transform_6, window_bounds = array<i64: 64, 128>}, {transform_indices = @transform_7, window_bounds = array<i64: 32, 128>}]} {
    %c0 = arith.constant 0 : index
    %c0_0 = arith.constant 0 : index
    %0 = vector.load %arg7[%c0, %c0_0] : memref<64x128xbf16, #tpu.memory_space<vmem>>, vector<64x128xbf16>
    %c0_1 = arith.constant 0 : index
    %c0_2 = arith.constant 0 : index
    %1 = vector.load %arg1[%c0_1, %c0_2] : memref<32x64xbf16, #tpu.memory_space<vmem>>, vector<32x64xbf16>
    %cst = arith.constant dense<0.000000e+00> : vector<32x128xf32>
    %2 = tpu.matmul %1, %0, %cst {dimension_numbers = #tpu.dot_dimension_numbers<[1], [0], [0], [1], [0, 0, 1, 1], [], []>} : vector<32x64xbf16>, vector<64x128xbf16>, vector<32x128xf32> -> vector<32x128xf32>
    %c0_3 = arith.constant 0 : index
    %c0_4 = arith.constant 0 : index
    %3 = vector.load %arg3[%c0_3, %c0_4] : memref<32x1xf32, #tpu.memory_space<vmem>>, vector<32x1xf32>
    %4 = vector.broadcast %3 : vector<32x1xf32> to vector<32x128xf32>
    %5 = arith.addf %2, %4 : vector<32x128xf32>
    %c0_5 = arith.constant 0 : index
    %c0_6 = arith.constant 0 : index
    %6 = vector.load %arg2[%c0_5, %c0_6] : memref<32x64xbf16, #tpu.memory_space<vmem>>, vector<32x64xbf16>
    %cst_7 = arith.constant dense<0.000000e+00> : vector<32x128xf32>
    %7 = tpu.matmul %6, %0, %cst_7 {dimension_numbers = #tpu.dot_dimension_numbers<[1], [0], [0], [1], [0, 0, 1, 1], [], []>} : vector<32x64xbf16>, vector<64x128xbf16>, vector<32x128xf32> -> vector<32x128xf32>
    %c0_8 = arith.constant 0 : index
    %c0_9 = arith.constant 0 : index
    %8 = vector.load %arg4[%c0_8, %c0_9] : memref<32x1xf32, #tpu.memory_space<vmem>>, vector<32x1xf32>
    %9 = vector.broadcast %8 : vector<32x1xf32> to vector<32x128xf32>
    %10 = arith.addf %7, %9 : vector<32x128xf32>
    %c0_10 = arith.constant 0 : index
    %c0_11 = arith.constant 0 : index
    %11 = vector.load %arg5[%c0_10, %c0_11] : memref<32x128xf32, #tpu.memory_space<vmem>>, vector<32x128xf32>
    %c0_12 = arith.constant 0 : index
    %c0_13 = arith.constant 0 : index
    %12 = vector.load %arg6[%c0_12, %c0_13] : memref<32x128xf32, #tpu.memory_space<vmem>>, vector<32x128xf32>
    %13 = arith.mulf %5, %12 : vector<32x128xf32>
    %14 = arith.addf %11, %13 : vector<32x128xf32>
    %15 = math.exp %10 : vector<32x128xf32>
    %16 = arith.mulf %12, %15 : vector<32x128xf32>
    %17 = tpu.iota {dimensions = array<i32: 0>} : vector<32x128xi32>
    %c8_i32 = arith.constant 8 : i32
    %c0_i32 = arith.constant 0 : i32
    %18 = arith.cmpi eq, %c8_i32, %c0_i32 : i32
    %c1_i32 = arith.constant 1 : i32
    %19 = arith.select %18, %c1_i32, %c8_i32 : i32
    %20 = vector.broadcast %19 : i32 to vector<32x128xi32>
    %21 = arith.remsi %17, %20 : vector<32x128xi32>
    %c0_i32_14 = arith.constant 0 : i32
    %22 = vector.broadcast %c0_i32_14 : i32 to vector<32x128xi32>
    %23 = arith.cmpi ne, %21, %22 : vector<32x128xi32>
    %c0_i32_15 = arith.constant 0 : i32
    %24 = vector.broadcast %c0_i32_15 : i32 to vector<32x128xi32>
    %25 = arith.cmpi slt, %21, %24 : vector<32x128xi32>
    %c0_i32_16 = arith.constant 0 : i32
    %26 = arith.cmpi slt, %19, %c0_i32_16 : i32
    %27 = vector.broadcast %26 : i1 to vector<32x128xi1>
    %28 = vector.broadcast %27 : vector<32x128xi1> to vector<32x128xi1>
    %29 = arith.xori %25, %28 : vector<32x128xi1>
    %30 = arith.andi %29, %23 : vector<32x128xi1>
    %31 = vector.broadcast %19 : i32 to vector<32x128xi32>
    %32 = arith.addi %21, %31 : vector<32x128xi32>
    %33 = arith.select %30, %32, %21 : vector<32x128xi1>, vector<32x128xi32>
    %c3_i32 = arith.constant 3 : i32
    %34 = vector.broadcast %c3_i32 : i32 to vector<32x128xi32>
    %35 = arith.cmpi slt, %33, %34 : vector<32x128xi32>
    %cst_17 = arith.constant -5.000000e-01 : f32
    %cst_18 = arith.constant 5.000000e-01 : f32
    %36 = vector.broadcast %cst_17 : f32 to vector<32x128xf32>
    %37 = vector.broadcast %cst_18 : f32 to vector<32x128xf32>
    %38 = arith.select %35, %36, %37 : vector<32x128xi1>, vector<32x128xf32>
    %39 = arith.mulf %38, %16 : vector<32x128xf32>
    %40 = arith.addf %14, %39 : vector<32x128xf32>
    %c6_i32 = arith.constant 6 : i32
    %41 = vector.broadcast %c6_i32 : i32 to vector<32x128xi32>
    %42 = arith.cmpi eq, %33, %41 : vector<32x128xi32>
    %43 = arith.negf %5 : vector<32x128xf32>
    %44 = math.exp %43 : vector<32x128xf32>
    %cst_19 = arith.constant 1.000000e+00 : f32
    %45 = vector.broadcast %cst_19 : f32 to vector<32x128xf32>
    %46 = arith.addf %45, %44 : vector<32x128xf32>
    %47 = arith.divf %45, %46 : vector<32x128xf32>
    %48 = arith.select %42, %47, %40 : vector<32x128xi1>, vector<32x128xf32>
    %c0_20 = arith.constant 0 : index
    %c0_21 = arith.constant 0 : index
    %49 = vector.load %arg8[%c0_20, %c0_21] : memref<32x128xf32, #tpu.memory_space<vmem>>, vector<32x128xf32>
    tpu.vector_store %arg8[%c0_20, %c0_21], %48 {strides = array<i32>} : memref<32x128xf32, #tpu.memory_space<vmem>>, vector<32x128xf32>,
    return
  }
  func.func @transform_0(%arg0: i32) -> (i32, i32) {
    %c0_i32 = arith.constant 0 : i32
    %c0_i32_0 = arith.constant 0 : i32
    %c0_i32_1 = arith.constant 0 : i32
    return %c0_i32, %c0_i32_0 : i32, i32
  }
  func.func @transform_1(%arg0: i32) -> (i32, i32) {
    %c0_i32 = arith.constant 0 : i32
    %c0_i32_0 = arith.constant 0 : i32
    %c0_i32_1 = arith.constant 0 : i32
    return %c0_i32, %c0_i32_0 : i32, i32
  }
  func.func @transform_2(%arg0: i32) -> (i32, i32) {
    %c0_i32 = arith.constant 0 : i32
    %c0_i32_0 = arith.constant 0 : i32
    %c0_i32_1 = arith.constant 0 : i32
    return %c0_i32, %c0_i32_0 : i32, i32
  }
  func.func @transform_3(%arg0: i32) -> (i32, i32) {
    %c0_i32 = arith.constant 0 : i32
    %c0_i32_0 = arith.constant 0 : i32
    %c0_i32_1 = arith.constant 0 : i32
    return %c0_i32, %c0_i32_0 : i32, i32
  }
  func.func @transform_4(%arg0: i32) -> (i32, i32) {
    %c0_i32 = arith.constant 0 : i32
    %c0_i32_0 = arith.constant 0 : i32
    return %c0_i32, %arg0 : i32, i32
  }
  func.func @transform_5(%arg0: i32) -> (i32, i32) {
    %c0_i32 = arith.constant 0 : i32
    %c0_i32_0 = arith.constant 0 : i32
    return %c0_i32, %arg0 : i32, i32
  }
  func.func @transform_6(%arg0: i32) -> (i32, i32) {
    %c0_i32 = arith.constant 0 : i32
    %c0_i32_0 = arith.constant 0 : i32
    return %c0_i32, %arg0 : i32, i32
  }
  func.func @transform_7(%arg0: i32) -> (i32, i32) {
    %c0_i32 = arith.constant 0 : i32
    %c0_i32_0 = arith.constant 0 : i32
    return %c0_i32, %arg0 : i32, i32
  }
}

module attributes {stable_mosaic.version = 11 : i64} {
  func.func @_matmul_bias_act_kernel(%arg0: i32, %arg1: i32, %arg2: memref<64x512xbf16, #tpu.memory_space<vmem>>, %arg3: memref<512x128xbf16, #tpu.memory_space<vmem>>, %arg4: memref<1x128xf32, #tpu.memory_space<vmem>>, %arg5: memref<64x128xbf16, #tpu.memory_space<vmem>>, %arg6: memref<64x128xf32, #tpu.memory_space<vmem>>) attributes {dimension_semantics = [#tpu.dimension_semantics<parallel>, #tpu.dimension_semantics<arbitrary>], iteration_bounds = array<i64: 1, 1>, scalar_prefetch = 0 : i64, scratch_operands = 1 : i64, tpu.core_type = #tpu.core_type<tc>, window_params = [{transform_indices = @transform_0, window_bounds = array<i64: 64, 512>}, {transform_indices = @transform_1, window_bounds = array<i64: 512, 128>}, {pipeline_mode = #tpu.pipeline_mode<synchronous>, transform_indices = @transform_2, window_bounds = array<i64: 1, 128>}, {transform_indices = @transform_3, window_bounds = array<i64: 64, 128>}]} {
    %c0_i32 = arith.constant 0 : i32
    %0 = arith.cmpi eq, %arg1, %c0_i32 : i32
    %1 = arith.extui %0 : i1 to i32
    %c0_i32_0 = arith.constant 0 : i32
    %2 = arith.cmpi ne, %1, %c0_i32_0 : i32
    scf.if %2 {
      %cst_10 = arith.constant 0.000000e+00 : f32
      %12 = vector.broadcast %cst_10 : f32 to vector<64x128xf32>
      %c0_11 = arith.constant 0 : index
      %c0_12 = arith.constant 0 : index
      %13 = vector.load %arg6[%c0_11, %c0_12] : memref<64x128xf32, #tpu.memory_space<vmem>>, vector<64x128xf32>
      tpu.vector_store %arg6[%c0_11, %c0_12], %12 {strides = array<i32>} : memref<64x128xf32, #tpu.memory_space<vmem>>, vector<64x128xf32>,
    } else {
    }
    %c0 = arith.constant 0 : index
    %c0_1 = arith.constant 0 : index
    %3 = vector.load %arg6[%c0, %c0_1] : memref<64x128xf32, #tpu.memory_space<vmem>>, vector<64x128xf32>
    %c0_2 = arith.constant 0 : index
    %c0_3 = arith.constant 0 : index
    %4 = vector.load %arg2[%c0_2, %c0_3] : memref<64x512xbf16, #tpu.memory_space<vmem>>, vector<64x512xbf16>
    %c0_4 = arith.constant 0 : index
    %c0_5 = arith.constant 0 : index
    %5 = vector.load %arg3[%c0_4, %c0_5] : memref<512x128xbf16, #tpu.memory_space<vmem>>, vector<512x128xbf16>
    %cst = arith.constant dense<0.000000e+00> : vector<64x128xf32>
    %6 = tpu.matmul %4, %5, %cst {dimension_numbers = #tpu.dot_dimension_numbers<[1], [0], [0], [1], [0, 0, 1, 1], [], []>} : vector<64x512xbf16>, vector<512x128xbf16>, vector<64x128xf32> -> vector<64x128xf32>
    %7 = arith.addf %3, %6 : vector<64x128xf32>
    %c0_6 = arith.constant 0 : index
    %c0_7 = arith.constant 0 : index
    %8 = vector.load %arg6[%c0_6, %c0_7] : memref<64x128xf32, #tpu.memory_space<vmem>>, vector<64x128xf32>
    tpu.vector_store %arg6[%c0_6, %c0_7], %7 {strides = array<i32>} : memref<64x128xf32, #tpu.memory_space<vmem>>, vector<64x128xf32>,
    %c0_i32_8 = arith.constant 0 : i32
    %9 = arith.cmpi eq, %arg1, %c0_i32_8 : i32
    %10 = arith.extui %9 : i1 to i32
    %c0_i32_9 = arith.constant 0 : i32
    %11 = arith.cmpi ne, %10, %c0_i32_9 : i32
    scf.if %11 {
      %c0_10 = arith.constant 0 : index
      %c0_11 = arith.constant 0 : index
      %12 = vector.load %arg6[%c0_10, %c0_11] : memref<64x128xf32, #tpu.memory_space<vmem>>, vector<64x128xf32>
      %c0_12 = arith.constant 0 : index
      %c0_13 = arith.constant 0 : index
      %13 = vector.load %arg4[%c0_12, %c0_13] : memref<1x128xf32, #tpu.memory_space<vmem>>, vector<1x128xf32>
      %14 = vector.broadcast %13 : vector<1x128xf32> to vector<64x128xf32>
      %15 = arith.addf %12, %14 : vector<64x128xf32>
      %cst_14 = arith.constant 0.000000e+00 : f32
      %16 = vector.broadcast %cst_14 : f32 to vector<64x128xf32>
      %17 = arith.maximumf %15, %16 : vector<64x128xf32>
      %18 = arith.truncf %17 : vector<64x128xf32> to vector<64x128xbf16>
      %c0_15 = arith.constant 0 : index
      %c0_16 = arith.constant 0 : index
      %19 = vector.load %arg5[%c0_15, %c0_16] : memref<64x128xbf16, #tpu.memory_space<vmem>>, vector<64x128xbf16>
      tpu.vector_store %arg5[%c0_15, %c0_16], %18 {strides = array<i32>} : memref<64x128xbf16, #tpu.memory_space<vmem>>, vector<64x128xbf16>,
    } else {
    }
    return
  }
  func.func @transform_0(%arg0: i32, %arg1: i32) -> (i32, i32) {
    %c0_i32 = arith.constant 0 : i32
    return %arg0, %arg1 : i32, i32
  }
  func.func @transform_1(%arg0: i32, %arg1: i32) -> (i32, i32) {
    %c0_i32 = arith.constant 0 : i32
    %c0_i32_0 = arith.constant 0 : i32
    return %arg1, %c0_i32 : i32, i32
  }
  func.func @transform_2(%arg0: i32, %arg1: i32) -> (i32, i32) {
    %c0_i32 = arith.constant 0 : i32
    %c0_i32_0 = arith.constant 0 : i32
    %c0_i32_1 = arith.constant 0 : i32
    return %c0_i32, %c0_i32_0 : i32, i32
  }
  func.func @transform_3(%arg0: i32, %arg1: i32) -> (i32, i32) {
    %c0_i32 = arith.constant 0 : i32
    %c0_i32_0 = arith.constant 0 : i32
    return %arg0, %c0_i32 : i32, i32
  }
}

module attributes {stable_mosaic.version = 11 : i64} {
  func.func @_matmul_bias_act_kernel(%arg0: i32, %arg1: i32, %arg2: memref<64x128xbf16, #tpu.memory_space<vmem>>, %arg3: memref<128x256xbf16, #tpu.memory_space<vmem>>, %arg4: memref<1x256xf32, #tpu.memory_space<vmem>>, %arg5: memref<64x256xf32, #tpu.memory_space<vmem>>, %arg6: memref<64x256xf32, #tpu.memory_space<vmem>>) attributes {dimension_semantics = [#tpu.dimension_semantics<parallel>, #tpu.dimension_semantics<arbitrary>], iteration_bounds = array<i64: 1, 1>, scalar_prefetch = 0 : i64, scratch_operands = 1 : i64, tpu.core_type = #tpu.core_type<tc>, window_params = [{transform_indices = @transform_0, window_bounds = array<i64: 64, 128>}, {transform_indices = @transform_1, window_bounds = array<i64: 128, 256>}, {pipeline_mode = #tpu.pipeline_mode<synchronous>, transform_indices = @transform_2, window_bounds = array<i64: 1, 256>}, {transform_indices = @transform_3, window_bounds = array<i64: 64, 256>}]} {
    %c0_i32 = arith.constant 0 : i32
    %0 = arith.cmpi eq, %arg1, %c0_i32 : i32
    %1 = arith.extui %0 : i1 to i32
    %c0_i32_0 = arith.constant 0 : i32
    %2 = arith.cmpi ne, %1, %c0_i32_0 : i32
    scf.if %2 {
      %cst_10 = arith.constant 0.000000e+00 : f32
      %12 = vector.broadcast %cst_10 : f32 to vector<64x256xf32>
      %c0_11 = arith.constant 0 : index
      %c0_12 = arith.constant 0 : index
      %13 = vector.load %arg6[%c0_11, %c0_12] : memref<64x256xf32, #tpu.memory_space<vmem>>, vector<64x256xf32>
      tpu.vector_store %arg6[%c0_11, %c0_12], %12 {strides = array<i32>} : memref<64x256xf32, #tpu.memory_space<vmem>>, vector<64x256xf32>,
    } else {
    }
    %c0 = arith.constant 0 : index
    %c0_1 = arith.constant 0 : index
    %3 = vector.load %arg6[%c0, %c0_1] : memref<64x256xf32, #tpu.memory_space<vmem>>, vector<64x256xf32>
    %c0_2 = arith.constant 0 : index
    %c0_3 = arith.constant 0 : index
    %4 = vector.load %arg2[%c0_2, %c0_3] : memref<64x128xbf16, #tpu.memory_space<vmem>>, vector<64x128xbf16>
    %c0_4 = arith.constant 0 : index
    %c0_5 = arith.constant 0 : index
    %5 = vector.load %arg3[%c0_4, %c0_5] : memref<128x256xbf16, #tpu.memory_space<vmem>>, vector<128x256xbf16>
    %cst = arith.constant dense<0.000000e+00> : vector<64x256xf32>
    %6 = tpu.matmul %4, %5, %cst {dimension_numbers = #tpu.dot_dimension_numbers<[1], [0], [0], [1], [0, 0, 1, 1], [], []>} : vector<64x128xbf16>, vector<128x256xbf16>, vector<64x256xf32> -> vector<64x256xf32>
    %7 = arith.addf %3, %6 : vector<64x256xf32>
    %c0_6 = arith.constant 0 : index
    %c0_7 = arith.constant 0 : index
    %8 = vector.load %arg6[%c0_6, %c0_7] : memref<64x256xf32, #tpu.memory_space<vmem>>, vector<64x256xf32>
    tpu.vector_store %arg6[%c0_6, %c0_7], %7 {strides = array<i32>} : memref<64x256xf32, #tpu.memory_space<vmem>>, vector<64x256xf32>,
    %c0_i32_8 = arith.constant 0 : i32
    %9 = arith.cmpi eq, %arg1, %c0_i32_8 : i32
    %10 = arith.extui %9 : i1 to i32
    %c0_i32_9 = arith.constant 0 : i32
    %11 = arith.cmpi ne, %10, %c0_i32_9 : i32
    scf.if %11 {
      %c0_10 = arith.constant 0 : index
      %c0_11 = arith.constant 0 : index
      %12 = vector.load %arg6[%c0_10, %c0_11] : memref<64x256xf32, #tpu.memory_space<vmem>>, vector<64x256xf32>
      %c0_12 = arith.constant 0 : index
      %c0_13 = arith.constant 0 : index
      %13 = vector.load %arg4[%c0_12, %c0_13] : memref<1x256xf32, #tpu.memory_space<vmem>>, vector<1x256xf32>
      %14 = vector.broadcast %13 : vector<1x256xf32> to vector<64x256xf32>
      %15 = arith.addf %12, %14 : vector<64x256xf32>
      %16 = tpu.iota {dimensions = array<i32: 1>} : vector<64x256xi32>
      %c14_i32 = arith.constant 14 : i32
      %17 = vector.broadcast %c14_i32 : i32 to vector<64x256xi32>
      %18 = arith.cmpi sge, %16, %17 : vector<64x256xi32>
      %c142_i32 = arith.constant 142 : i32
      %19 = vector.broadcast %c142_i32 : i32 to vector<64x256xi32>
      %20 = arith.cmpi slt, %16, %19 : vector<64x256xi32>
      %21 = arith.andi %18, %20 : vector<64x256xi1>
      %22 = arith.negf %15 : vector<64x256xf32>
      %23 = math.exp %22 : vector<64x256xf32>
      %cst_14 = arith.constant 1.000000e+00 : f32
      %24 = vector.broadcast %cst_14 : f32 to vector<64x256xf32>
      %25 = arith.addf %24, %23 : vector<64x256xf32>
      %26 = arith.divf %24, %25 : vector<64x256xf32>
      %27 = arith.select %21, %26, %15 : vector<64x256xi1>, vector<64x256xf32>
      %c0_15 = arith.constant 0 : index
      %c0_16 = arith.constant 0 : index
      %28 = vector.load %arg5[%c0_15, %c0_16] : memref<64x256xf32, #tpu.memory_space<vmem>>, vector<64x256xf32>
      tpu.vector_store %arg5[%c0_15, %c0_16], %27 {strides = array<i32>} : memref<64x256xf32, #tpu.memory_space<vmem>>, vector<64x256xf32>,
    } else {
    }
    return
  }
  func.func @transform_0(%arg0: i32, %arg1: i32) -> (i32, i32) {
    %c0_i32 = arith.constant 0 : i32
    return %arg0, %arg1 : i32, i32
  }
  func.func @transform_1(%arg0: i32, %arg1: i32) -> (i32, i32) {
    %c0_i32 = arith.constant 0 : i32
    %c0_i32_0 = arith.constant 0 : i32
    return %arg1, %c0_i32 : i32, i32
  }
  func.func @transform_2(%arg0: i32, %arg1: i32) -> (i32, i32) {
    %c0_i32 = arith.constant 0 : i32
    %c0_i32_0 = arith.constant 0 : i32
    %c0_i32_1 = arith.constant 0 : i32
    return %c0_i32, %c0_i32_0 : i32, i32
  }
  func.func @transform_3(%arg0: i32, %arg1: i32) -> (i32, i32) {
    %c0_i32 = arith.constant 0 : i32
    %c0_i32_0 = arith.constant 0 : i32
    return %arg0, %c0_i32 : i32, i32
  }
}

</mosaic_0001>

<bundles_post_ra>
// kernel: lung_net_forward.5
= control target key start
LH: loop header
LB: loop body
LE: loop exit
PB: predicated region body
PF: predicated region fallthrough
CT: control target
= control target key end

     0   :  { %s2317_s12 = smov 0   ;;  %s2319_s13 = smov 0   ;;  %s2532_s0 = inlined_call_operand.vmem [shape: bf16[1024,32], index: 0, kind: input, shape index: {}]   ;;  %s2533_s1 = inlined_call_operand.vmem [shape: bf16[32,128], index: 1, kind: input, shape index: {}]   ;;  %s2534_s2 = inlined_call_operand.vmem [shape: f32[1,128], index: 2, kind: input, shape index: {}]   ;;  %s2535_s3 = inlined_call_operand.vmem [shape: bf16[1024,128], index: 3, kind: output, shape index: {}]  }
   0x1   :  { %s2321_s14 = smov 0  }
   0x2 LB: > { %s25_s15 = sadd.s32 1, %s2291_s13  ;;  %p1716_p0 = scmp.ge.s32.totalorder %s2295_s14, 1  ;;  %s2295_s14 = sphi %s2321_s14, %s13_s14   ;;  %s2291_s13 = sphi %s2319_s13, %s2537_s13   ;;  %s2287_s12 = sphi %s2317_s12, %s2536_s12  }
   0x3   : > { %p27_p1 = scmp.ge.s32.totalorder %s25_s15, 2  ;;  %p166_p2 = scmp.lt.s32.totalorder %s2295_s14, 3 }
   0x5   : > { %s2539_s15 = smov (%p27_p1, %s25_s15), 0  ;;  %p167_p3 = pnand %p1716_p0, %p166_p2 }
   0x6   : > { %s1717_s18 = sshll.u32 (!%p167_p3), %s2287_s12, 6 }
   0x7   : > { %170 = sbr.rel (%p167_p3) target bundleno = 283 (0x11b), region = 32  ;;  %p199_p4 = scmp.lt.s32.totalorder (!%p167_p3), %s1717_s18, 127 }
   0xc   : > { %v2239_v0 = vld [vmem:[%s2533_s1 + $0x8] sm:$0xff]   ;;  %v2240_v1 = vld [vmem:[%s2533_s1] sm:$0xff]   ;;  %s2541_s18 = smov (!%p199_p4, %s1717_s18), 127  ;;  %vm592_vm0 = vcmask 261120  }
   0xd   : > { %2143 = vmatprep.subr.bf16.mxu0 %v2239_v0  ;;  %2211 = vmatprep.subr.bf16.mxu1 %v2239_v0  ;;  %s1718_s21 = sshll.u32 %s2541_s18, 2  ;;  %v2418_v35 = vld [vmem:[%s2534_s2] ss:$0 sm:$0xff] }
   0xe   : > { %2144 = vmatpush3.bf16.msra.mxu0 %v2239_v0  ;;  %2213 = vmatpush3.bf16.msra.mxu1 %v2239_v0  ;;  %s2349_s24 = scalar_lea.vmem %s2532_s0, %s1718_s21  ;;  %s2432_s29 = scalar_lea.vmem %s2535_s3, %s1718_s21 }
   0xf   : > { %2145 = vmatprep.subr.bf16.mxu0 %v2240_v1  ;;  %2212 = vmatprep.subr.bf16.mxu1 %v2240_v1  ;;  %v2241_v2 = vld [vmem:[%s2349_s24] sm:$0xff]   ;;  %v2243_v4 = vld [vmem:[%s2349_s24 + $0x8] sm:$0xff]   ;;  %v2245_v6 = vld [vmem:[%s2349_s24 + $0x10] sm:$0xff]  }
  0x10   : > { %v2242_v3 = vld [vmem:[%s2349_s24 + $0x80] sm:$0xff]   ;;  %2147 = vmatprep.mubr.msk.bf16.mxu0 %vm592_vm0, %v2241_v2  ;;  %v2244_v5 = vld [vmem:[%s2349_s24 + $0x88] sm:$0xff]   ;;  %v2246_v7 = vld [vmem:[%s2349_s24 + $0x90] sm:$0xff]  }
  0x11   : > { %2179 = vmatprep.mubr.msk.bf16.mxu1 %vm592_vm0, %v2242_v3  ;;  %v2247_v8 = vld [vmem:[%s2349_s24 + $0x18] sm:$0xff]   ;;  %v2249_v10 = vld [vmem:[%s2349_s24 + $0x20] sm:$0xff]   ;;  %v2251_v12 = vld [vmem:[%s2349_s24 + $0x28] sm:$0xff]  }
  0x12   : > { %2146 = vmatpush3.bf16.msra.mxu0 %v2240_v1  ;;  %2214 = vmatpush3.bf16.msra.mxu1 %v2240_v1  ;;  %v2248_v9 = vld [vmem:[%s2349_s24 + $0x98] sm:$0xff]   ;;  %v2250_v11 = vld [vmem:[%s2349_s24 + $0xa0] sm:$0xff]   ;;  %v2252_v13 = vld [vmem:[%s2349_s24 + $0xa8] sm:$0xff]  }
  0x13   : > { %v2253_v14 = vld [vmem:[%s2349_s24 + $0x30] sm:$0xff]   ;;  %v2255_v16 = vld [vmem:[%s2349_s24 + $0x38] sm:$0xff]   ;;  %v2257_v18 = vld [vmem:[%s2349_s24 + $0x40] sm:$0xff]  }
  0x14   : > { %v2254_v15 = vld [vmem:[%s2349_s24 + $0xb0] sm:$0xff]   ;;  %v2256_v17 = vld [vmem:[%s2349_s24 + $0xb8] sm:$0xff]   ;;  %v2258_v19 = vld [vmem:[%s2349_s24 + $0xc0] sm:$0xff]  }
  0x15   : > { %2148 = vmatmul.mubr.msk.bf16.vlgmr.msra.gmra.mxu0 %vm592_vm0, %v2243_v4  ;;  %2180 = vmatmul.mubr.msk.bf16.vlgmr.msra.gmra.mxu1 %vm592_vm0, %v2244_v5  ;;  %v2259_v20 = vld [vmem:[%s2349_s24 + $0x48] sm:$0xff]   ;;  %v2261_v22 = vld [vmem:[%s2349_s24 + $0x50] sm:$0xff]   ;;  %v2263_v24 = vld [vmem:[%s2349_s24 + $0x58] sm:$0xff]  }
  0x16   : > { %2151 = vmatprep.mubr.msk.bf16.mxu0 %vm592_vm0, %v2245_v6  ;;  %2183 = vmatprep.mubr.msk.bf16.mxu1 %vm592_vm0, %v2246_v7  ;;  %v2260_v21 = vld [vmem:[%s2349_s24 + $0xc8] sm:$0xff]   ;;  %v2262_v23 = vld [vmem:[%s2349_s24 + $0xd0] sm:$0xff]   ;;  %v2264_v25 = vld [vmem:[%s2349_s24 + $0xd8] sm:$0xff]  }
  0x17   : > { %v2265_v26 = vld [vmem:[%s2349_s24 + $0x60] sm:$0xff]   ;;  %v2267_v28 = vld [vmem:[%s2349_s24 + $0x68] sm:$0xff]   ;;  %v2269_v30 = vld [vmem:[%s2349_s24 + $0x70] sm:$0xff]  }
  0x18   : > { %v2266_v27 = vld [vmem:[%s2349_s24 + $0xe0] sm:$0xff]   ;;  %v2268_v29 = vld [vmem:[%s2349_s24 + $0xe8] sm:$0xff]   ;;  %v2270_v31 = vld [vmem:[%s2349_s24 + $0xf0] sm:$0xff]  }
  0x19   : > { %v2271_v32 = vld [vmem:[%s2349_s24 + $0x78] sm:$0xff]  }
  0x1a   : > { %v2272_v33 = vld [vmem:[%s2349_s24 + $0xf8] sm:$0xff]  }
  0x1d   : > { %2152 = vmatmul.mubr.msk.bf16.gmra.mxu0 %vm592_vm0, %v2247_v8  ;;  %2184 = vmatmul.mubr.msk.bf16.gmra.mxu1 %vm592_vm0, %v2248_v9 }
  0x1e   : > { %2155 = vmatprep.mubr.msk.bf16.mxu0 %vm592_vm0, %v2249_v10  ;;  %2187 = vmatprep.mubr.msk.bf16.mxu1 %vm592_vm0, %v2250_v11 }
  0x25   : > { %2156 = vmatmul.mubr.msk.bf16.gmra.mxu0 %vm592_vm0, %v2251_v12  ;;  %2188 = vmatmul.mubr.msk.bf16.gmra.mxu1 %vm592_vm0, %v2252_v13 }
  0x26   : > { %2159 = vmatprep.mubr.msk.bf16.mxu0 %vm592_vm0, %v2253_v14  ;;  %2191 = vmatprep.mubr.msk.bf16.mxu1 %vm592_vm0, %v2254_v15 }
  0x2d   : > { %2160 = vmatmul.mubr.msk.bf16.gmra.mxu0 %vm592_vm0, %v2255_v16  ;;  %2192 = vmatmul.mubr.msk.bf16.gmra.mxu1 %vm592_vm0, %v2256_v17 }
  0x2e   : > { %2163 = vmatprep.mubr.msk.bf16.mxu0 %vm592_vm0, %v2257_v18  ;;  %2195 = vmatprep.mubr.msk.bf16.mxu1 %vm592_vm0, %v2258_v19 }
  0x35   : > { %2164 = vmatmul.mubr.msk.bf16.gmra.mxu0 %vm592_vm0, %v2259_v20  ;;  %2196 = vmatmul.mubr.msk.bf16.gmra.mxu1 %vm592_vm0, %v2260_v21 }
  0x36   : > { %2167 = vmatprep.mubr.msk.bf16.mxu0 %vm592_vm0, %v2261_v22  ;;  %2199 = vmatprep.mubr.msk.bf16.mxu1 %vm592_vm0, %v2262_v23 }
  0x3d   : > { %2168 = vmatmul.mubr.msk.bf16.gmra.mxu0 %vm592_vm0, %v2263_v24  ;;  %2200 = vmatmul.mubr.msk.bf16.gmra.mxu1 %vm592_vm0, %v2264_v25 }
  0x3e   : > { %2171 = vmatprep.mubr.msk.bf16.mxu0 %vm592_vm0, %v2265_v26  ;;  %2203 = vmatprep.mubr.msk.bf16.mxu1 %vm592_vm0, %v2266_v27 }
  0x45   : > { %2172 = vmatmul.mubr.msk.bf16.gmra.mxu0 %vm592_vm0, %v2267_v28  ;;  %2204 = vmatmul.mubr.msk.bf16.gmra.mxu1 %vm592_vm0, %v2268_v29 }
  0x46   : > { %2175 = vmatprep.mubr.msk.bf16.mxu0 %vm592_vm0, %v2269_v30  ;;  %2207 = vmatprep.mubr.msk.bf16.mxu1 %vm592_vm0, %v2270_v31 }
  0x4d   : > { %2176 = vmatmul.mubr.msk.bf16.gmra.mxu0 %vm592_vm0, %v2271_v32  ;;  %2208 = vmatmul.mubr.msk.bf16.gmra.mxu1 %vm592_vm0, %v2272_v33 }
  0xd5   : > { %v2149_v34 = vpop.f32.mrf.mxu0  ;;  %v2181_v36 = vpop.f32.mrf.mxu1 }
  0xd6   : > { %v1182_v38 = vadd.f32 %v2149_v34, %v2418_v35  ;;  %v1214_v40 = vadd.f32 %v2181_v36, %v2418_v35 }
  0xd7   : > { %v723_v37 = vpop.f32.mrf.mxu0  ;;  %v851_v39 = vpop.f32.mrf.mxu1 }
  0xd8   : > { %v1180_v42 = vadd.f32 %v2418_v35, %v723_v37  ;;  %v1212_v45 = vadd.f32 %v2418_v35, %v851_v39  ;;  %v1246_v48 = vmax.f32 %v1182_v38, 0.0  ;;  %v1278_v52 = vmax.f32 %v1214_v40, 0.0 }
  0xd9   : > { %v2150_v41 = vpop.f32.mrf.mxu0  ;;  %v2182_v44 = vpop.f32.mrf.mxu1 }
  0xda   : > { %v1183_v43 = vadd.f32 %v2150_v41, %v2418_v35  ;;  %v1215_v46 = vadd.f32 %v2182_v44, %v2418_v35  ;;  %v1244_v56 = vmax.f32 %v1180_v42, 0.0  ;;  %v1276_v60 = vmax.f32 %v1212_v45, 0.0 }
  0xdb   : > { %v726_v47 = vpop.f32.mrf.mxu0  ;;  %v854_v51 = vpop.f32.mrf.mxu1 }
  0xdc   : > { %v1247_v49 = vmax.f32 %v1183_v43, 0.0  ;;  %v1181_v50 = vadd.f32 %v2418_v35, %v726_v47  ;;  %v1279_v53 = vmax.f32 %v1215_v46, 0.0  ;;  %v1213_v54 = vadd.f32 %v2418_v35, %v854_v51 }
  0xdd   : > { %v2153_v55 = vpop.f32.mrf.mxu0  ;;  %v2185_v59 = vpop.f32.mrf.mxu1 }
  0xde   : > { %v1926_v57 = vpack.c.bf16 %v1247_v49, %v1246_v48  ;;  %v1245_v58 = vmax.f32 %v1181_v50, 0.0  ;;  %v2006_v61 = vpack.c.bf16 %v1279_v53, %v1278_v52  ;;  %v1277_v62 = vmax.f32 %v1213_v54, 0.0 }
  0xdf   : > { %v739_v63 = vpop.f32.mrf.mxu0  ;;  %v1186_v1 = vadd.f32 %v2153_v55, %v2418_v35  ;;  %v867_v2 = vpop.f32.mrf.mxu1  ;;  %v1218_v4 = vadd.f32 %v2185_v59, %v2418_v35 }
  0xe0   : > { %2078 = vst [vmem:[%s2432_s29 + $0x8] sm:$0xff] %v1926_v57   ;;  %v1921_v0 = vpack.c.bf16 %v1245_v58, %v1244_v56  ;;  %2094 = vst [vmem:[%s2432_s29 + $0x88] sm:$0xff] %v2006_v61   ;;  %v2001_v3 = vpack.c.bf16 %v1277_v62, %v1276_v60  ;;  %v1184_v6 = vadd.f32 %v2418_v35, %v739_v63 }
  0xe1   : > { %v2154_v5 = vpop.f32.mrf.mxu0  ;;  %v2186_v8 = vpop.f32.mrf.mxu1  ;;  %v1216_v9 = vadd.f32 %v2418_v35, %v867_v2  ;;  %v1250_v12 = vmax.f32 %v1186_v1, 0.0  ;;  %v1282_v16 = vmax.f32 %v1218_v4, 0.0 }
  0xe2   : > { %1922 = vst [vmem:[%s2432_s29] sm:$0xff] %v1921_v0   ;;  %v1187_v7 = vadd.f32 %v2154_v5, %v2418_v35  ;;  %2093 = vst [vmem:[%s2432_s29 + $0x80] sm:$0xff] %v2001_v3   ;;  %v1219_v10 = vadd.f32 %v2186_v8, %v2418_v35  ;;  %v1248_v20 = vmax.f32 %v1184_v6, 0.0 }
  0xe3   : > { %v742_v11 = vpop.f32.mrf.mxu0  ;;  %v870_v15 = vpop.f32.mrf.mxu1  ;;  %v1280_v24 = vmax.f32 %v1216_v9, 0.0 }
  0xe4   : > { %v1251_v13 = vmax.f32 %v1187_v7, 0.0  ;;  %v1185_v14 = vadd.f32 %v2418_v35, %v742_v11  ;;  %v1283_v17 = vmax.f32 %v1219_v10, 0.0  ;;  %v1217_v18 = vadd.f32 %v2418_v35, %v870_v15 }
  0xe5   : > { %v2157_v19 = vpop.f32.mrf.mxu0  ;;  %v2189_v23 = vpop.f32.mrf.mxu1 }
  0xe6   : > { %v1936_v21 = vpack.c.bf16 %v1251_v13, %v1250_v12  ;;  %v1249_v22 = vmax.f32 %v1185_v14, 0.0  ;;  %v2016_v25 = vpack.c.bf16 %v1283_v17, %v1282_v16  ;;  %v1281_v26 = vmax.f32 %v1217_v18, 0.0 }
  0xe7   : > { %v755_v27 = vpop.f32.mrf.mxu0  ;;  %v1190_v29 = vadd.f32 %v2157_v19, %v2418_v35  ;;  %v883_v30 = vpop.f32.mrf.mxu1  ;;  %v1222_v32 = vadd.f32 %v2189_v23, %v2418_v35 }
  0xe8   : > { %2080 = vst [vmem:[%s2432_s29 + $0x18] sm:$0xff] %v1936_v21   ;;  %v1931_v28 = vpack.c.bf16 %v1249_v22, %v1248_v20  ;;  %2096 = vst [vmem:[%s2432_s29 + $0x98] sm:$0xff] %v2016_v25   ;;  %v2011_v31 = vpack.c.bf16 %v1281_v26, %v1280_v24  ;;  %v1188_v34 = vadd.f32 %v2418_v35, %v755_v27 }
  0xe9   : > { %v2158_v33 = vpop.f32.mrf.mxu0  ;;  %v2190_v37 = vpop.f32.mrf.mxu1  ;;  %v1220_v38 = vadd.f32 %v2418_v35, %v883_v30  ;;  %v1254_v41 = vmax.f32 %v1190_v29, 0.0  ;;  %v1286_v45 = vmax.f32 %v1222_v32, 0.0 }
  0xea   : > { %2079 = vst [vmem:[%s2432_s29 + $0x10] sm:$0xff] %v1931_v28   ;;  %v1191_v36 = vadd.f32 %v2158_v33, %v2418_v35  ;;  %2095 = vst [vmem:[%s2432_s29 + $0x90] sm:$0xff] %v2011_v31   ;;  %v1223_v39 = vadd.f32 %v2190_v37, %v2418_v35  ;;  %v1252_v49 = vmax.f32 %v1188_v34, 0.0 }
  0xeb   : > { %v758_v40 = vpop.f32.mrf.mxu0  ;;  %v886_v44 = vpop.f32.mrf.mxu1  ;;  %v1284_v53 = vmax.f32 %v1220_v38, 0.0 }
  0xec   : > { %v1255_v42 = vmax.f32 %v1191_v36, 0.0  ;;  %v1189_v43 = vadd.f32 %v2418_v35, %v758_v40  ;;  %v1287_v46 = vmax.f32 %v1223_v39, 0.0  ;;  %v1221_v47 = vadd.f32 %v2418_v35, %v886_v44 }
  0xed   : > { %v2161_v48 = vpop.f32.mrf.mxu0  ;;  %v2193_v52 = vpop.f32.mrf.mxu1 }
  0xee   : > { %v1946_v50 = vpack.c.bf16 %v1255_v42, %v1254_v41  ;;  %v1253_v51 = vmax.f32 %v1189_v43, 0.0  ;;  %v2026_v54 = vpack.c.bf16 %v1287_v46, %v1286_v45  ;;  %v1285_v55 = vmax.f32 %v1221_v47, 0.0 }
  0xef   : > { %v771_v56 = vpop.f32.mrf.mxu0  ;;  %v1194_v58 = vadd.f32 %v2161_v48, %v2418_v35  ;;  %v899_v59 = vpop.f32.mrf.mxu1  ;;  %v1226_v61 = vadd.f32 %v2193_v52, %v2418_v35 }
  0xf0   : > { %2082 = vst [vmem:[%s2432_s29 + $0x28] sm:$0xff] %v1946_v50   ;;  %v1941_v57 = vpack.c.bf16 %v1253_v51, %v1252_v49  ;;  %2098 = vst [vmem:[%s2432_s29 + $0xa8] sm:$0xff] %v2026_v54   ;;  %v2021_v60 = vpack.c.bf16 %v1285_v55, %v1284_v53  ;;  %v1192_v63 = vadd.f32 %v2418_v35, %v771_v56 }
  0xf1   : > { %v2162_v62 = vpop.f32.mrf.mxu0  ;;  %v2194_v1 = vpop.f32.mrf.mxu1  ;;  %v1224_v2 = vadd.f32 %v2418_v35, %v899_v59  ;;  %v1258_v5 = vmax.f32 %v1194_v58, 0.0  ;;  %v1290_v9 = vmax.f32 %v1226_v61, 0.0 }
  0xf2   : > { %2081 = vst [vmem:[%s2432_s29 + $0x20] sm:$0xff] %v1941_v57   ;;  %v1195_v0 = vadd.f32 %v2162_v62, %v2418_v35  ;;  %2097 = vst [vmem:[%s2432_s29 + $0xa0] sm:$0xff] %v2021_v60   ;;  %v1227_v3 = vadd.f32 %v2194_v1, %v2418_v35  ;;  %v1256_v13 = vmax.f32 %v1192_v63, 0.0 }
  0xf3   : > { %v774_v4 = vpop.f32.mrf.mxu0  ;;  %v902_v8 = vpop.f32.mrf.mxu1  ;;  %v1288_v17 = vmax.f32 %v1224_v2, 0.0 }
  0xf4   : > { %v1259_v6 = vmax.f32 %v1195_v0, 0.0  ;;  %v1193_v7 = vadd.f32 %v2418_v35, %v774_v4  ;;  %v1291_v10 = vmax.f32 %v1227_v3, 0.0  ;;  %v1225_v11 = vadd.f32 %v2418_v35, %v902_v8 }
  0xf5   : > { %v2165_v12 = vpop.f32.mrf.mxu0  ;;  %v2197_v16 = vpop.f32.mrf.mxu1 }
  0xf6   : > { %v1956_v14 = vpack.c.bf16 %v1259_v6, %v1258_v5  ;;  %v1257_v15 = vmax.f32 %v1193_v7, 0.0  ;;  %v2036_v18 = vpack.c.bf16 %v1291_v10, %v1290_v9  ;;  %v1289_v19 = vmax.f32 %v1225_v11, 0.0 }
  0xf7   : > { %v787_v20 = vpop.f32.mrf.mxu0  ;;  %v1198_v22 = vadd.f32 %v2165_v12, %v2418_v35  ;;  %v915_v23 = vpop.f32.mrf.mxu1  ;;  %v1230_v25 = vadd.f32 %v2197_v16, %v2418_v35 }
  0xf8   : > { %2084 = vst [vmem:[%s2432_s29 + $0x38] sm:$0xff] %v1956_v14   ;;  %v1951_v21 = vpack.c.bf16 %v1257_v15, %v1256_v13  ;;  %2100 = vst [vmem:[%s2432_s29 + $0xb8] sm:$0xff] %v2036_v18   ;;  %v2031_v24 = vpack.c.bf16 %v1289_v19, %v1288_v17  ;;  %v1196_v27 = vadd.f32 %v2418_v35, %v787_v20 }
  0xf9   : > { %v2166_v26 = vpop.f32.mrf.mxu0  ;;  %v2198_v29 = vpop.f32.mrf.mxu1  ;;  %v1228_v30 = vadd.f32 %v2418_v35, %v915_v23  ;;  %v1262_v33 = vmax.f32 %v1198_v22, 0.0  ;;  %v1294_v38 = vmax.f32 %v1230_v25, 0.0 }
  0xfa   : > { %2083 = vst [vmem:[%s2432_s29 + $0x30] sm:$0xff] %v1951_v21   ;;  %v1199_v28 = vadd.f32 %v2166_v26, %v2418_v35  ;;  %2099 = vst [vmem:[%s2432_s29 + $0xb0] sm:$0xff] %v2031_v24   ;;  %v1231_v31 = vadd.f32 %v2198_v29, %v2418_v35  ;;  %v1260_v42 = vmax.f32 %v1196_v27, 0.0 }
  0xfb   : > { %v790_v32 = vpop.f32.mrf.mxu0  ;;  %v918_v37 = vpop.f32.mrf.mxu1  ;;  %v1292_v46 = vmax.f32 %v1228_v30, 0.0 }
  0xfc   : > { %v1263_v34 = vmax.f32 %v1199_v28, 0.0  ;;  %v1197_v36 = vadd.f32 %v2418_v35, %v790_v32  ;;  %v1295_v39 = vmax.f32 %v1231_v31, 0.0  ;;  %v1229_v40 = vadd.f32 %v2418_v35, %v918_v37 }
  0xfd   : > { %v2169_v41 = vpop.f32.mrf.mxu0  ;;  %v2201_v45 = vpop.f32.mrf.mxu1 }
  0xfe   : > { %v1966_v43 = vpack.c.bf16 %v1263_v34, %v1262_v33  ;;  %v1261_v44 = vmax.f32 %v1197_v36, 0.0  ;;  %v2046_v47 = vpack.c.bf16 %v1295_v39, %v1294_v38  ;;  %v1293_v48 = vmax.f32 %v1229_v40, 0.0 }
  0xff   : > { %v803_v49 = vpop.f32.mrf.mxu0  ;;  %v1202_v51 = vadd.f32 %v2169_v41, %v2418_v35  ;;  %v931_v52 = vpop.f32.mrf.mxu1  ;;  %v1234_v54 = vadd.f32 %v2201_v45, %v2418_v35 }
 0x100   : > { %2086 = vst [vmem:[%s2432_s29 + $0x48] sm:$0xff] %v1966_v43   ;;  %v1961_v50 = vpack.c.bf16 %v1261_v44, %v1260_v42  ;;  %2102 = vst [vmem:[%s2432_s29 + $0xc8] sm:$0xff] %v2046_v47   ;;  %v2041_v53 = vpack.c.bf16 %v1293_v48, %v1292_v46  ;;  %v1200_v56 = vadd.f32 %v2418_v35, %v803_v49 }
 0x101   : > { %v2170_v55 = vpop.f32.mrf.mxu0  ;;  %v2202_v58 = vpop.f32.mrf.mxu1  ;;  %v1232_v59 = vadd.f32 %v2418_v35, %v931_v52  ;;  %v1266_v62 = vmax.f32 %v1202_v51, 0.0  ;;  %v1298_v2 = vmax.f32 %v1234_v54, 0.0 }
 0x102   : > { %2085 = vst [vmem:[%s2432_s29 + $0x40] sm:$0xff] %v1961_v50   ;;  %v1203_v57 = vadd.f32 %v2170_v55, %v2418_v35  ;;  %2101 = vst [vmem:[%s2432_s29 + $0xc0] sm:$0xff] %v2041_v53   ;;  %v1235_v60 = vadd.f32 %v2202_v58, %v2418_v35  ;;  %v1264_v6 = vmax.f32 %v1200_v56, 0.0 }
 0x103   : > { %v806_v61 = vpop.f32.mrf.mxu0  ;;  %v934_v1 = vpop.f32.mrf.mxu1  ;;  %v1296_v10 = vmax.f32 %v1232_v59, 0.0 }
 0x104   : > { %v1267_v63 = vmax.f32 %v1203_v57, 0.0  ;;  %v1201_v0 = vadd.f32 %v2418_v35, %v806_v61  ;;  %v1299_v3 = vmax.f32 %v1235_v60, 0.0  ;;  %v1233_v4 = vadd.f32 %v2418_v35, %v934_v1 }
 0x105   : > { %v2173_v5 = vpop.f32.mrf.mxu0  ;;  %v2205_v9 = vpop.f32.mrf.mxu1 }
 0x106   : > { %v1976_v7 = vpack.c.bf16 %v1267_v63, %v1266_v62  ;;  %v1265_v8 = vmax.f32 %v1201_v0, 0.0  ;;  %v2056_v11 = vpack.c.bf16 %v1299_v3, %v1298_v2  ;;  %v1297_v12 = vmax.f32 %v1233_v4, 0.0 }
 0x107   : > { %v819_v13 = vpop.f32.mrf.mxu0  ;;  %v1206_v15 = vadd.f32 %v2173_v5, %v2418_v35  ;;  %v947_v16 = vpop.f32.mrf.mxu1  ;;  %v1238_v18 = vadd.f32 %v2205_v9, %v2418_v35 }
 0x108   : > { %2088 = vst [vmem:[%s2432_s29 + $0x58] sm:$0xff] %v1976_v7   ;;  %v1971_v14 = vpack.c.bf16 %v1265_v8, %v1264_v6  ;;  %2104 = vst [vmem:[%s2432_s29 + $0xd8] sm:$0xff] %v2056_v11   ;;  %v2051_v17 = vpack.c.bf16 %v1297_v12, %v1296_v10  ;;  %v1204_v20 = vadd.f32 %v2418_v35, %v819_v13 }
 0x109   : > { %v2174_v19 = vpop.f32.mrf.mxu0  ;;  %v2206_v22 = vpop.f32.mrf.mxu1  ;;  %v1236_v23 = vadd.f32 %v2418_v35, %v947_v16  ;;  %v1270_v26 = vmax.f32 %v1206_v15, 0.0  ;;  %v1302_v30 = vmax.f32 %v1238_v18, 0.0 }
 0x10a   : > { %2087 = vst [vmem:[%s2432_s29 + $0x50] sm:$0xff] %v1971_v14   ;;  %v1207_v21 = vadd.f32 %v2174_v19, %v2418_v35  ;;  %2103 = vst [vmem:[%s2432_s29 + $0xd0] sm:$0xff] %v2051_v17   ;;  %v1239_v24 = vadd.f32 %v2206_v22, %v2418_v35  ;;  %v1268_v34 = vmax.f32 %v1204_v20, 0.0 }
 0x10b   : > { %v822_v25 = vpop.f32.mrf.mxu0  ;;  %v950_v29 = vpop.f32.mrf.mxu1  ;;  %v1300_v39 = vmax.f32 %v1236_v23, 0.0 }
 0x10c   : > { %v1271_v27 = vmax.f32 %v1207_v21, 0.0  ;;  %v1205_v28 = vadd.f32 %v2418_v35, %v822_v25  ;;  %v1303_v31 = vmax.f32 %v1239_v24, 0.0  ;;  %v1237_v32 = vadd.f32 %v2418_v35, %v950_v29 }
 0x10d   : > { %v2177_v33 = vpop.f32.mrf.mxu0  ;;  %v2209_v38 = vpop.f32.mrf.mxu1 }
 0x10e   : > { %v1986_v36 = vpack.c.bf16 %v1271_v27, %v1270_v26  ;;  %v1269_v37 = vmax.f32 %v1205_v28, 0.0  ;;  %v2066_v40 = vpack.c.bf16 %v1303_v31, %v1302_v30  ;;  %v1301_v41 = vmax.f32 %v1237_v32, 0.0 }
 0x10f   : > { %v835_v42 = vpop.f32.mrf.mxu0  ;;  %v1210_v44 = vadd.f32 %v2177_v33, %v2418_v35  ;;  %v963_v45 = vpop.f32.mrf.mxu1  ;;  %v1242_v47 = vadd.f32 %v2209_v38, %v2418_v35 }
 0x110   : > { %2090 = vst [vmem:[%s2432_s29 + $0x68] sm:$0xff] %v1986_v36   ;;  %v1981_v43 = vpack.c.bf16 %v1269_v37, %v1268_v34  ;;  %2106 = vst [vmem:[%s2432_s29 + $0xe8] sm:$0xff] %v2066_v40   ;;  %v2061_v46 = vpack.c.bf16 %v1301_v41, %v1300_v39  ;;  %v1208_v49 = vadd.f32 %v2418_v35, %v835_v42 }
 0x111   : > { %v2178_v48 = vpop.f32.mrf.mxu0  ;;  %v2210_v51 = vpop.f32.mrf.mxu1  ;;  %v1240_v52 = vadd.f32 %v2418_v35, %v963_v45  ;;  %v1274_v55 = vmax.f32 %v1210_v44, 0.0  ;;  %v1306_v59 = vmax.f32 %v1242_v47, 0.0 }
 0x112   : > { %2089 = vst [vmem:[%s2432_s29 + $0x60] sm:$0xff] %v1981_v43   ;;  %v1211_v50 = vadd.f32 %v2178_v48, %v2418_v35  ;;  %2105 = vst [vmem:[%s2432_s29 + $0xe0] sm:$0xff] %v2061_v46   ;;  %v1243_v53 = vadd.f32 %v2210_v51, %v2418_v35  ;;  %v1272_v62 = vmax.f32 %v1208_v49, 0.0 }
 0x113   : > { %v838_v54 = vpop.f32.mrf.mxu0  ;;  %v966_v58 = vpop.f32.mrf.mxu1  ;;  %v1304_v1 = vmax.f32 %v1240_v52, 0.0 }
 0x114   : > { %v1275_v56 = vmax.f32 %v1211_v50, 0.0  ;;  %v1209_v57 = vadd.f32 %v2418_v35, %v838_v54  ;;  %v1307_v60 = vmax.f32 %v1243_v53, 0.0  ;;  %v1241_v61 = vadd.f32 %v2418_v35, %v966_v58 }
 0x116   : > { %v1996_v63 = vpack.c.bf16 %v1275_v56, %v1274_v55  ;;  %v1273_v0 = vmax.f32 %v1209_v57, 0.0  ;;  %v2076_v2 = vpack.c.bf16 %v1307_v60, %v1306_v59  ;;  %v1305_v3 = vmax.f32 %v1241_v61, 0.0 }
 0x118   : > { %2092 = vst [vmem:[%s2432_s29 + $0x78] sm:$0xff] %v1996_v63   ;;  %v1991_v4 = vpack.c.bf16 %v1273_v0, %v1272_v62  ;;  %2108 = vst [vmem:[%s2432_s29 + $0xf8] sm:$0xff] %v2076_v2   ;;  %v2071_v5 = vpack.c.bf16 %v1305_v3, %v1304_v1 }
 0x11a   : > { %2091 = vst [vmem:[%s2432_s29 + $0x70] sm:$0xff] %v1991_v4   ;;  %2107 = vst [vmem:[%s2432_s29 + $0xf0] sm:$0xff] %v2071_v5  }
 0x11b PF: > { %s13_s14 = sadd.s32 1, %s2295_s14   ;;  %s2536_s12 = smov %s2291_s13 }
 0x11c   : > { %p10_p5 = scmp.ge.s32.totalorder %s13_s14, 4   ;;  %s2537_s13 = smov %s2539_s15 }
 0x11e   :  { %12 = sbr.rel (!%p10_p5) target bundleno = 2 (0x2), region = 73 }

// kernel: sub.9
= control target key start
LH: loop header
LB: loop body
LE: loop exit
PB: predicated region body
PF: predicated region fallthrough
CT: control target
= control target key end

     0   :  { %vm64_vm0 = vcmask 1041409   ;;  %vm68_vm1 = vcmask 1042434   ;;  %s327_s30 = smov 52   ;;  %s328_s2 = smov 56   ;;  %vm70_vm2 = vcmask 31744   ;;  %vm84_vm3 = vcmask 523744   ;;  %s423_s0 = inlined_call_operand.vmem [shape: f32[4,4,4,3], index: 0, kind: input, shape index: {}]   ;;  %s424_s1 = inlined_call_operand.vmem [shape: f32[64,3], index: 1, kind: output, shape index: {}]  }
   0x1   :  { %v300_v0 = vld [vmem:[%s423_s0 + $0x2c] sm:$0xf]  ;;  %v304_v1 = vld [vmem:[%s423_s0 + $0x1c] sm:$0xf]  ;;  %v301_v3 = vld [vmem:[%s423_s0 + $0x28] sm:$0xf] }
   0x2   :  { %v308_v2 = vld [vmem:[%s423_s0 + $0xc] sm:$0xf]  ;;  %9 = vst [vmem:[#allocation1 + $0x58] sm:$0xf] %v300_v0  ;;  %29 = vst [vmem:[#allocation1 + $0x38] sm:$0xf] %v304_v1 }
   0x3   :  { %49 = vst [vmem:[#allocation1 + $0x18] sm:$0xf] %v308_v2  ;;  %14 = vst [vmem:[#allocation1 + $0x50] sm:$0xf] %v301_v3  ;;  %v305_v4 = vld [vmem:[%s423_s0 + $0x18] sm:$0xf] }
   0x4   :  { %v309_v5 = vld [vmem:[%s423_s0 + $0x8] sm:$0xf]  ;;  %34 = vst [vmem:[#allocation1 + $0x30] sm:$0xf] %v305_v4  ;;  %v302_v6 = vld [vmem:[%s423_s0 + $0x24] sm:$0xf] }
   0x5   :  { %54 = vst [vmem:[#allocation1 + $0x10] sm:$0xf] %v309_v5  ;;  %v306_v7 = vld [vmem:[%s423_s0 + $0x14] sm:$0xf]  ;;  %19 = vst [vmem:[#allocation1 + $0x48] sm:$0xf] %v302_v6 }
   0x6   :  { %39 = vst [vmem:[#allocation1 + $0x28] sm:$0xf] %v306_v7  ;;  %v310_v8 = vld [vmem:[%s423_s0 + $0x4] sm:$0xf]  ;;  %v303_v9 = vld [vmem:[%s423_s0 + $0x20] sm:$0xf] }
   0x7   :  { %58 = vst [vmem:[#allocation1 + $0x8] sm:$0xf] %v310_v8  ;;  %24 = vst [vmem:[#allocation1 + $0x40] sm:$0xf] %v303_v9  ;;  %v307_v10 = vld [vmem:[%s423_s0 + $0x10] sm:$0xf] }
   0x8   :  { %v59_v11 = vld [vmem:[%s423_s0] sm:$0xf]  ;;  %44 = vst [vmem:[#allocation1 + $0x20] sm:$0xf] %v307_v10  ;;  %s326_s0 = smov 60   ;;  %s329_s3 = smov 48  }
   0x9   :  { %60 = vst [vmem:[#allocation1] sm:$0xf] %v59_v11  ;;  %v75_v13 = vld [vmem:[#allocation1 + $0x3a] sm:$0x2]   ;;  %v103_v17 = vld [vmem:[#allocation1 + $0x38] sm:$0x2]  }
   0xa   :  { %v73_v12 = vld [vmem:[#allocation1 + $0x1b] sm:$0x1]   ;;  %v101_v16 = vld [vmem:[#allocation1 + $0x19] sm:$0x1]   ;;  %v87_v21 = vld [vmem:[#allocation1 + $0x1a] sm:$0x1]  }
   0xb   :  { %v79_v14 = vld [vmem:[#allocation1 + $0x59] sm:$0x4]   ;;  %v77_v15 = vsel %vm64_vm0, %v75_v13, %v73_v12  ;;  %v107_v18 = vld [vmem:[#allocation1 + $0x57] sm:$0x4]   ;;  %v105_v20 = vsel %vm64_vm0, %v103_v17, %v101_v16  ;;  %v89_v22 = vld [vmem:[#allocation1 + $0x39] sm:$0x2]  }
   0xc   :  { %v81_v19 = vsel %vm68_vm1, %v79_v14, %v77_v15  ;;  %v93_v23 = vld [vmem:[#allocation1 + $0x58] sm:$0x4]   ;;  %v109_v24 = vsel %vm68_vm1, %v107_v18, %v105_v20  ;;  %v91_v25 = vsel %vm64_vm0, %v89_v22, %v87_v21  ;;  %v115_v26 = vld [vmem:[#allocation1 + $0x18] sm:$0x1]   ;;  %v129_v31 = vld [vmem:[#allocation1 + $0x13] sm:$0x1]  }
   0xd   :  { %82 = vrot.lane.b32.xlu0 %v81_v19, %s326_s0  ;;  %v117_v27 = vld [vmem:[#allocation1 + $0x37] sm:$0x2]   ;;  %110 = vrot.lane.b32.xlu1 %v109_v24, %s327_s30  ;;  %v95_v29 = vsel %vm68_vm1, %v93_v23, %v91_v25  ;;  %v131_v32 = vld [vmem:[#allocation1 + $0x32] sm:$0x2]   ;;  %v143_v36 = vld [vmem:[#allocation1 + $0x12] sm:$0x1]  }
   0xe   :  { %v121_v28 = vld [vmem:[#allocation1 + $0x56] sm:$0x4]   ;;  %v119_v30 = vsel %vm64_vm0, %v117_v27, %v115_v26  ;;  %v133_v34 = vsel %vm64_vm0, %v131_v32, %v129_v31  ;;  %v135_v35 = vld [vmem:[#allocation1 + $0x51] sm:$0x4]   ;;  %v145_v37 = vld [vmem:[#allocation1 + $0x31] sm:$0x2]  }
   0xf   :  { %v123_v33 = vsel %vm68_vm1, %v121_v28, %v119_v30  ;;  %v147_v38 = vsel %vm64_vm0, %v145_v37, %v143_v36  ;;  %v149_v39 = vld [vmem:[#allocation1 + $0x50] sm:$0x4]   ;;  %v157_v40 = vld [vmem:[#allocation1 + $0x11] sm:$0x1]   ;;  %v171_v42 = vld [vmem:[#allocation1 + $0x10] sm:$0x1]   ;;  %v137_v44 = vsel %vm68_vm1, %v135_v35, %v133_v34 }
  0x10   :  { %v159_v41 = vld [vmem:[#allocation1 + $0x30] sm:$0x2]   ;;  %v173_v43 = vld [vmem:[#allocation1 + $0x2f] sm:$0x2]   ;;  %v151_v45 = vsel %vm68_vm1, %v149_v39, %v147_v38  ;;  %v185_v50 = vld [vmem:[#allocation1 + $0xb] sm:$0x1]  }
  0x11   :  { %96 = vrot.lane.b32.xlu0 %v95_v29, %s328_s2  ;;  %124 = vrot.lane.b32.xlu1 %v123_v33, %s329_s3  ;;  %v161_v46 = vsel %vm64_vm0, %v159_v41, %v157_v40  ;;  %v163_v47 = vld [vmem:[#allocation1 + $0x4f] sm:$0x4]   ;;  %v175_v48 = vsel %vm64_vm0, %v173_v43, %v171_v42  ;;  %v177_v49 = vld [vmem:[#allocation1 + $0x4e] sm:$0x4]   ;;  %v187_v51 = vld [vmem:[#allocation1 + $0x2a] sm:$0x2]  }
  0x12   :  { %s330_s4 = smov 44   ;;  %v199_v52 = vld [vmem:[#allocation1 + $0xa] sm:$0x1]   ;;  %s331_s5 = smov 40   ;;  %v165_v54 = vsel %vm68_vm1, %v163_v47, %v161_v46  ;;  %v179_v55 = vsel %vm68_vm1, %v177_v49, %v175_v48  ;;  %v189_v56 = vsel %vm64_vm0, %v187_v51, %v185_v50  ;;  %v191_v57 = vld [vmem:[#allocation1 + $0x49] sm:$0x4]  }
  0x13   :  { %v201_v53 = vld [vmem:[#allocation1 + $0x29] sm:$0x2]   ;;  %v213_v60 = vld [vmem:[#allocation1 + $0x9] sm:$0x1]   ;;  %v227_v62 = vld [vmem:[#allocation1 + $0x8] sm:$0x1]   ;;  %v193_v2 = vsel %vm68_vm1, %v191_v57, %v189_v56 }
  0x14   :  { %v205_v58 = vld [vmem:[#allocation1 + $0x48] sm:$0x4]   ;;  %v203_v59 = vsel %vm64_vm0, %v201_v53, %v199_v52  ;;  %v215_v61 = vld [vmem:[#allocation1 + $0x28] sm:$0x2]   ;;  %s332_s6 = smov 36   ;;  %s333_s7 = smov 32  }
  0x15   :  { %138 = vrot.lane.b32.xlu0 %v137_v44, %s330_s4  ;;  %152 = vrot.lane.b32.xlu1 %v151_v45, %s331_s5  ;;  %v229_v63 = vld [vmem:[#allocation1 + $0x27] sm:$0x2]   ;;  %v61_v0 = vld [vmem:[#allocation1] sm:$0x1]   ;;  %v207_v5 = vsel %vm68_vm1, %v205_v58, %v203_v59  ;;  %v217_v6 = vsel %vm64_vm0, %v215_v61, %v213_v60  ;;  %v219_v7 = vld [vmem:[#allocation1 + $0x47] sm:$0x4]  }
  0x16   :  { %v63_v1 = vld [vmem:[#allocation1 + $0x1f] sm:$0x2]   ;;  %v231_v9 = vsel %vm64_vm0, %v229_v63, %v227_v62  ;;  %v233_v10 = vld [vmem:[#allocation1 + $0x46] sm:$0x4]   ;;  %v241_v11 = vld [vmem:[#allocation1 + $0x3] sm:$0x1]   ;;  %v221_v15 = vsel %vm68_vm1, %v219_v7, %v217_v6 }
  0x17   :  { %v65_v3 = vsel %vm64_vm0, %v63_v1, %v61_v0  ;;  %v67_v4 = vld [vmem:[#allocation1 + $0x3e] sm:$0x4]   ;;  %v243_v12 = vld [vmem:[#allocation1 + $0x22] sm:$0x2]   ;;  %s334_s8 = smov 28   ;;  %s335_s9 = smov 24   ;;  %v235_v16 = vsel %vm68_vm1, %v233_v10, %v231_v9 }
  0x18   :  { %v69_v8 = vsel %vm68_vm1, %v67_v4, %v65_v3  ;;  %v255_v13 = vld [vmem:[#allocation1 + $0x2] sm:$0x1]   ;;  %v245_v17 = vsel %vm64_vm0, %v243_v12, %v241_v11  ;;  %v247_v18 = vld [vmem:[#allocation1 + $0x41] sm:$0x4]   ;;  %v269_v21 = vld [vmem:[#allocation1 + $0x1] sm:$0x1]  }
  0x19   :  { %166 = vrot.lane.b32.xlu0 %v165_v54, %s332_s6  ;;  %180 = vrot.lane.b32.xlu1 %v179_v55, %s333_s7  ;;  %71 = vst.msk [vmem:[#allocation0] sm:$0x7] %vm70_vm2, %v69_v8   ;;  %v257_v14 = vld [vmem:[#allocation1 + $0x21] sm:$0x2]   ;;  %v271_v22 = vld [vmem:[#allocation1 + $0x20] sm:$0x2]   ;;  %v249_v23 = vsel %vm68_vm1, %v247_v18, %v245_v17 }
  0x1a   :  { %v259_v19 = vsel %vm64_vm0, %v257_v14, %v255_v13  ;;  %v261_v20 = vld [vmem:[#allocation1 + $0x40] sm:$0x4]   ;;  %s336_s10 = smov 20   ;;  %s337_s11 = smov 16   ;;  %v273_v25 = vsel %vm64_vm0, %v271_v22, %v269_v21  ;;  %v275_v26 = vld [vmem:[#allocation1 + $0x3f] sm:$0x4]  }
  0x1b   :  { %v263_v24 = vsel %vm68_vm1, %v261_v20, %v259_v19  ;;  %s338_s12 = smov 12   ;;  %s339_s13 = smov 8   ;;  %v277_v27 = vsel %vm68_vm1, %v275_v26, %v273_v25  ;;  %vm98_vm4 = vcmask 490944   ;;  %vm112_vm5 = vcmask 458144  }
  0x1c   :  { %s340_s14 = smov 4   ;;  %vm126_vm6 = vcmask 425344   ;;  %vm140_vm7 = vcmask 392544   ;;  %vm154_vm8 = vcmask 359744   ;;  %vm168_vm9 = vcmask 326944  }
  0x1d   :  { %194 = vrot.lane.b32.xlu0 %v193_v2, %s334_s8  ;;  %208 = vrot.lane.b32.xlu1 %v207_v5, %s335_s9  ;;  %vm182_vm10 = vcmask 294144   ;;  %vm196_vm11 = vcmask 261344   ;;  %vm210_vm12 = vcmask 228544   ;;  %vm224_vm13 = vcmask 195744  }
  0x1e   :  { %vm238_vm14 = vcmask 162944   ;;  %vm252_vm15 = vcmask 130144   ;;  %vm266_vm0 = vcmask 97344   ;;  %vm280_vm1 = vcmask 64544  }
  0x21   :  { %222 = vrot.lane.b32.xlu0 %v221_v15, %s336_s10  ;;  %236 = vrot.lane.b32.xlu1 %v235_v16, %s337_s11 }
  0x25   :  { %250 = vrot.lane.b32.xlu0 %v249_v23, %s338_s12  ;;  %264 = vrot.lane.b32.xlu1 %v263_v24, %s339_s13 }
  0x29   :  { %278 = vrot.lane.b32.xlu0 %v277_v27, %s340_s14 }
  0x7f   :  { %v83_v28 = vpop.permute.xlu0 %82   ;;  %v111_v29 = vpop.permute.xlu1 %110  }
  0x80   :  { %85 = vst.msk [vmem:[#allocation0] sm:$0x7] %vm84_vm3, %v83_v28  }
  0x83   :  { %v97_v30 = vpop.permute.xlu0 %96   ;;  %v125_v31 = vpop.permute.xlu1 %124  }
  0x84   :  { %99 = vst.msk [vmem:[#allocation0] sm:$0x7] %vm98_vm4, %v97_v30  }
  0x85   :  { %113 = vst.msk [vmem:[#allocation0] sm:$0x7] %vm112_vm5, %v111_v29  }
  0x86   :  { %127 = vst.msk [vmem:[#allocation0] sm:$0x7] %vm126_vm6, %v125_v31  }
  0x87   :  { %v139_v32 = vpop.permute.xlu0 %138   ;;  %v153_v33 = vpop.permute.xlu1 %152  }
  0x88   :  { %141 = vst.msk [vmem:[#allocation0] sm:$0x7] %vm140_vm7, %v139_v32  }
  0x89   :  { %155 = vst.msk [vmem:[#allocation0] sm:$0x7] %vm154_vm8, %v153_v33  }
  0x8b   :  { %v167_v34 = vpop.permute.xlu0 %166   ;;  %v181_v35 = vpop.permute.xlu1 %180  }
  0x8c   :  { %169 = vst.msk [vmem:[#allocation0] sm:$0x7] %vm168_vm9, %v167_v34  }
  0x8d   :  { %183 = vst.msk [vmem:[#allocation0] sm:$0x7] %vm182_vm10, %v181_v35  }
  0x8f   :  { %v195_v36 = vpop.permute.xlu0 %194   ;;  %v209_v37 = vpop.permute.xlu1 %208  }
  0x90   :  { %197 = vst.msk [vmem:[#allocation0] sm:$0x7] %vm196_vm11, %v195_v36  }
  0x91   :  { %211 = vst.msk [vmem:[#allocation0] sm:$0x7] %vm210_vm12, %v209_v37  }
  0x93   :  { %v223_v38 = vpop.permute.xlu0 %222   ;;  %v237_v39 = vpop.permute.xlu1 %236  }
  0x94   :  { %225 = vst.msk [vmem:[#allocation0] sm:$0x7] %vm224_vm13, %v223_v38  }
  0x95   :  { %239 = vst.msk [vmem:[#allocation0] sm:$0x7] %vm238_vm14, %v237_v39  }
  0x97   :  { %v251_v40 = vpop.permute.xlu0 %250   ;;  %v265_v41 = vpop.permute.xlu1 %264  }
  0x98   :  { %253 = vst.msk [vmem:[#allocation0] sm:$0x7] %vm252_vm15, %v251_v40  }
  0x99   :  { %267 = vst.msk [vmem:[#allocation0] sm:$0x7] %vm266_vm0, %v265_v41  }
  0x9b   :  { %v279_v42 = vpop.permute.xlu0 %278  }
  0x9c   :  { %281 = vst.msk [vmem:[#allocation0] sm:$0x7] %vm280_vm1, %v279_v42  }
  0xa3   :  { %v286_v43 = vld [vmem:[#allocation0] sm:$0xf] }
  0xa4   :  { %289 = vst [vmem:[%s424_s1] sm:$0xf] %v286_v43 }

// kernel: tile.11
= control target key start
LH: loop header
LB: loop body
LE: loop exit
PB: predicated region body
PF: predicated region fallthrough
CT: control target
= control target key end

     0   :  { %vm123_vm0 = vcmask 1047556   ;;  %vm125_vm1 = vcmask 523264   ;;  %vm153_vm2 = vcmask 1048064   ;;  %s337_s0 = inlined_call_operand.vmem [shape: f32[24,2,64], index: 0, kind: input, shape index: {}]   ;;  %s338_s1 = inlined_call_operand.vmem [shape: f32[24,128], index: 1, kind: output, shape index: {}]  }
   0x1   :  { %v215_v0 = vld [vmem:[%s337_s0 + $0xe] sm:$0x3]  ;;  %v216_v1 = vld [vmem:[%s337_s0 + $0xc] sm:$0x3]  ;;  %v217_v2 = vld [vmem:[%s337_s0 + $0xa] sm:$0x3] }
   0x2   :  { %89 = vst [vmem:[#allocation0 + $0x38] sm:$0x3] %v215_v0  ;;  %94 = vst [vmem:[#allocation0 + $0x30] sm:$0x3] %v216_v1  ;;  %v218_v3 = vld [vmem:[%s337_s0 + $0x8] sm:$0x3] }
   0x3   :  { %99 = vst [vmem:[#allocation0 + $0x28] sm:$0x3] %v217_v2  ;;  %v219_v4 = vld [vmem:[%s337_s0 + $0x6] sm:$0x3]  ;;  %v220_v5 = vld [vmem:[%s337_s0 + $0x4] sm:$0x3] }
   0x4   :  { %104 = vst [vmem:[#allocation0 + $0x20] sm:$0x3] %v218_v3  ;;  %109 = vst [vmem:[#allocation0 + $0x18] sm:$0x3] %v219_v4  ;;  %v221_v6 = vld [vmem:[%s337_s0 + $0x2] sm:$0x3] }
   0x5   :  { %114 = vst [vmem:[#allocation0 + $0x10] sm:$0x3] %v220_v5  ;;  %v119_v7 = vld [vmem:[%s337_s0] sm:$0x3]  ;;  %118 = vst [vmem:[#allocation0 + $0x8] sm:$0x3] %v221_v6 }
   0x6   :  { %120 = vst [vmem:[#allocation0] sm:$0x3] %v119_v7  ;;  %v207_v8 = vld [vmem:[%s337_s0 + $0x1e] sm:$0x3]  ;;  %v208_v9 = vld [vmem:[%s337_s0 + $0x1c] sm:$0x3] }
   0x7   :  { %v209_v10 = vld [vmem:[%s337_s0 + $0x1a] sm:$0x3]  ;;  %49 = vst [vmem:[#allocation0 + $0x78] sm:$0x3] %v207_v8  ;;  %54 = vst [vmem:[#allocation0 + $0x70] sm:$0x3] %v208_v9 }
   0x8   :  { %59 = vst [vmem:[#allocation0 + $0x68] sm:$0x3] %v209_v10  ;;  %v210_v11 = vld [vmem:[%s337_s0 + $0x18] sm:$0x3]  ;;  %v211_v12 = vld [vmem:[%s337_s0 + $0x16] sm:$0x3] }
   0x9   :  { %v212_v13 = vld [vmem:[%s337_s0 + $0x14] sm:$0x3]  ;;  %64 = vst [vmem:[#allocation0 + $0x60] sm:$0x3] %v210_v11  ;;  %69 = vst [vmem:[#allocation0 + $0x58] sm:$0x3] %v211_v12 }
   0xa   :  { %74 = vst [vmem:[#allocation0 + $0x50] sm:$0x3] %v212_v13  ;;  %v213_v14 = vld [vmem:[%s337_s0 + $0x12] sm:$0x3]  ;;  %v214_v15 = vld [vmem:[%s337_s0 + $0x10] sm:$0x3] }
   0xb   :  { %v199_v16 = vld [vmem:[%s337_s0 + $0x2e] sm:$0x3]  ;;  %79 = vst [vmem:[#allocation0 + $0x48] sm:$0x3] %v213_v14  ;;  %84 = vst [vmem:[#allocation0 + $0x40] sm:$0x3] %v214_v15 }
   0xc   :  { %9 = vst [vmem:[#allocation0 + $0xb8] sm:$0x3] %v199_v16  ;;  %v200_v17 = vld [vmem:[%s337_s0 + $0x2c] sm:$0x3]  ;;  %v201_v18 = vld [vmem:[%s337_s0 + $0x2a] sm:$0x3] }
   0xd   :  { %v202_v19 = vld [vmem:[%s337_s0 + $0x28] sm:$0x3]  ;;  %14 = vst [vmem:[#allocation0 + $0xb0] sm:$0x3] %v200_v17  ;;  %19 = vst [vmem:[#allocation0 + $0xa8] sm:$0x3] %v201_v18 }
   0xe   :  { %24 = vst [vmem:[#allocation0 + $0xa0] sm:$0x3] %v202_v19  ;;  %v203_v20 = vld [vmem:[%s337_s0 + $0x26] sm:$0x3]  ;;  %v204_v21 = vld [vmem:[%s337_s0 + $0x24] sm:$0x3] }
   0xf   :  { %v205_v22 = vld [vmem:[%s337_s0 + $0x22] sm:$0x3]  ;;  %29 = vst [vmem:[#allocation0 + $0x98] sm:$0x3] %v203_v20  ;;  %34 = vst [vmem:[#allocation0 + $0x90] sm:$0x3] %v204_v21 }
  0x10   :  { %39 = vst [vmem:[#allocation0 + $0x88] sm:$0x3] %v205_v22  ;;  %v206_v23 = vld [vmem:[%s337_s0 + $0x20] sm:$0x3]  ;;  %s227_s0 = smov 64  }
  0x11   :  { %v148_v24 = vld [vmem:[#allocation0 + $0x1] ss:$8 sm:$0xf0]   ;;  %44 = vst [vmem:[#allocation0 + $0x80] sm:$0x3] %v206_v23 }
  0x12   :  { %v122_v25 = vld [vmem:[#allocation0] ss:$8 sm:$0xf0]   ;;  %v146_v26 = vld [vmem:[#allocation0 + $0x1] ss:$8 sm:$0xf]  }
  0x13   :  { %v121_v27 = vld [vmem:[#allocation0] ss:$8 sm:$0xf]   ;;  %v150_v28 = vsel %vm123_vm0, %v148_v24, %v146_v26  ;;  %v158_v30 = vld [vmem:[#allocation0 + $0x41] ss:$8 sm:$0xf0]  }
  0x14   :  { %v124_v29 = vsel %vm123_vm0, %v122_v25, %v121_v27  ;;  %151 = vrot.lane.b32.xlu0 %v150_v28, %s227_s0  ;;  %v130_v31 = vld [vmem:[#allocation0 + $0x40] ss:$8 sm:$0xf0]   ;;  %v156_v32 = vld [vmem:[#allocation0 + $0x41] ss:$8 sm:$0xf]  }
  0x15   :  { %126 = vst.msk [vmem:[%s338_s1] sm:$0xff] %vm125_vm1, %v124_v29   ;;  %v128_v33 = vld [vmem:[#allocation0 + $0x40] ss:$8 sm:$0xf]   ;;  %v160_v34 = vsel %vm123_vm0, %v158_v30, %v156_v32 }
  0x16   :  { %v169_v35 = vld [vmem:[#allocation0 + $0x81] ss:$8 sm:$0xf0]   ;;  %v132_v36 = vsel %vm123_vm0, %v130_v31, %v128_v33  ;;  %v139_v37 = vld [vmem:[#allocation0 + $0x80] ss:$8 sm:$0xf0]  }
  0x17   :  { %222 = vst.msk [vmem:[%s338_s1 + $0x8] sm:$0xff] %vm125_vm1, %v132_v36  }
  0x18   :  { %161 = vrot.lane.b32.xlu0 %v160_v34, %s227_s0  ;;  %v167_v38 = vld [vmem:[#allocation0 + $0x81] ss:$8 sm:$0xf]   ;;  %v137_v39 = vld [vmem:[#allocation0 + $0x80] ss:$8 sm:$0xf]  }
  0x19   :  { %v171_v40 = vsel %vm123_vm0, %v169_v35, %v167_v38  ;;  %v141_v41 = vsel %vm123_vm0, %v139_v37, %v137_v39 }
  0x1a   :  { %172 = vrot.lane.b32.xlu1 %v171_v40, %s227_s0  ;;  %223 = vst.msk [vmem:[%s338_s1 + $0x10] sm:$0xff] %vm125_vm1, %v141_v41  }
  0x86   :  { %v152_v42 = vpop.permute.xlu0 %151  }
  0x87   :  { %154 = vst.msk [vmem:[%s338_s1] sm:$0xff] %vm153_vm2, %v152_v42  }
  0x8a   :  { %v162_v43 = vpop.permute.xlu0 %161  }
  0x8b   :  { %224 = vst.msk [vmem:[%s338_s1 + $0x8] sm:$0xff] %vm153_vm2, %v162_v43  }
  0x8c   :  { %v173_v44 = vpop.permute.xlu1 %172  }
  0x8d   :  { %225 = vst.msk [vmem:[%s338_s1 + $0x10] sm:$0xff] %vm153_vm2, %v173_v44  }

// kernel: lung_net_forward.6
= control target key start
LH: loop header
LB: loop body
LE: loop exit
PB: predicated region body
PF: predicated region fallthrough
CT: control target
= control target key end

     0   :  { %v1131_v0 = vmov 0   ;;  %vm451_vm0 = vcmask 392192   ;;  %s1393_s1 = inlined_call_operand.vmem [shape: bf16[432,128], index: 1, kind: input, shape index: {}]   ;;  %s1394_s0 = inlined_call_operand.vmem [shape: bf16[128,432], index: 0, kind: input, shape index: {}]   ;;  %s1395_s2 = inlined_call_operand.vmem [shape: f32[1,128], index: 2, kind: input, shape index: {}]   ;;  %s1396_s3 = inlined_call_operand.vmem [shape: bf16[128,128], index: 3, kind: output, shape index: {}]  }
   0x1   :  { %573 = vmatprep.subr.bf16.mxu1 %v1131_v0  ;;  %v1056_v1 = vld [vmem:[%s1393_s1 + $0xb8] sm:$0xff]   ;;  %v1059_v4 = vld [vmem:[%s1393_s1 + $0xb0] sm:$0xff]   ;;  %v1062_v7 = vld [vmem:[%s1393_s1 + $0xa8] sm:$0xff]  }
   0x2   :  { %v1057_v2 = vld [vmem:[%s1393_s1 + $0x78] sm:$0xff]   ;;  %574 = vmatpush1.bf16.msra.mxu1 %v1056_v1  ;;  %v1060_v5 = vld [vmem:[%s1393_s1 + $0x70] sm:$0xff]   ;;  %v1063_v8 = vld [vmem:[%s1393_s1 + $0x68] sm:$0xff]  }
   0x3   :  { %v1058_v3 = vld [vmem:[%s1393_s1 + $0x38] sm:$0xff]   ;;  %991 = vmatprep.subr.bf16.mxu0 %v1057_v2  ;;  %575 = vmatprep.subr.bf16.mxu1 %v1131_v0  ;;  %v1061_v6 = vld [vmem:[%s1393_s1 + $0x30] sm:$0xff]   ;;  %v1064_v9 = vld [vmem:[%s1393_s1 + $0x28] sm:$0xff]  }
   0x4   :  { %992 = vmatpush3.bf16.msra.mxu0 %v1058_v3  ;;  %v1065_v10 = vld [vmem:[%s1393_s1 + $0xa0] sm:$0xff]   ;;  %v1069_v13 = vld [vmem:[%s1393_s1 + $0x58] sm:$0xff]   ;;  %v1072_v16 = vld [vmem:[%s1393_s1 + $0x50] sm:$0xff]  }
   0x5   :  { %993 = vmatprep.subr.bf16.mxu0 %v1060_v5  ;;  %v1066_v11 = vld [vmem:[%s1393_s1 + $0x60] sm:$0xff]   ;;  %v1068_v14 = vld [vmem:[%s1393_s1 + $0x98] sm:$0xff]   ;;  %v1071_v17 = vld [vmem:[%s1393_s1 + $0x90] sm:$0xff]  }
   0x6   :  { %576 = vmatpush1.bf16.msra.mxu1 %v1059_v4  ;;  %v1067_v12 = vld [vmem:[%s1393_s1 + $0x20] sm:$0xff]   ;;  %v1070_v15 = vld [vmem:[%s1393_s1 + $0x18] sm:$0xff]   ;;  %v1073_v18 = vld [vmem:[%s1393_s1 + $0x10] sm:$0xff]  }
   0x7   :  { %577 = vmatprep.subr.bf16.mxu1 %v1131_v0  ;;  %v1075_v19 = vld [vmem:[%s1393_s1 + $0x48] sm:$0xff]   ;;  %v1078_v22 = vld [vmem:[%s1393_s1 + $0x40] sm:$0xff]   ;;  %v1083_v26 = vld [vmem:[%s1393_s1 + $0xd0] sm:$0xff]  }
   0x8   :  { %994 = vmatpush3.bf16.msra.mxu0 %v1061_v6  ;;  %v1074_v20 = vld [vmem:[%s1393_s1 + $0x88] sm:$0xff]   ;;  %v1082_v23 = vld [vmem:[%s1394_s0 + $0x4] ss:$16 sps:$4 sm:$0xff]   ;;  %v1080_v28 = vld [vmem:[%s1394_s0] ss:$16 sps:$4 sm:$0xff]  }
   0x9   :  { %995 = vmatprep.subr.bf16.mxu0 %v1063_v8  ;;  %v1076_v21 = vld [vmem:[%s1393_s1 + $0x8] sm:$0xff]   ;;  %v1077_v24 = vld [vmem:[%s1393_s1 + $0x80] sm:$0xff]   ;;  %508 = vmatprep.mubr.bf16.mxu0 %v1082_v23 }
   0xa   :  { %578 = vmatpush1.bf16.msra.mxu1 %v1062_v7  ;;  %v1079_v25 = vld [vmem:[%s1393_s1] sm:$0xff]   ;;  %v1091_v27 = vld [vmem:[%s1394_s0 + $0xc] ss:$16 sps:$4 sm:$0xff]   ;;  %v1089_v34 = vld [vmem:[%s1394_s0 + $0x8] ss:$16 sps:$4 sm:$0xff]  }
   0xb   :  { %579 = vmatprep.subr.bf16.mxu1 %v1131_v0  ;;  %v1085_v29 = vld [vmem:[%s1394_s0 + $0x24] ss:$16 sps:$4 sm:$0xff]   ;;  %903 = vmatprep.mubr.msk.bf16.mxu1 %vm451_vm0, %v1091_v27  ;;  %v1084_v30 = vld [vmem:[%s1393_s1 + $0xc8] sm:$0xff]   ;;  %v1088_v32 = vld [vmem:[%s1394_s0 + $0x20] ss:$16 sps:$4 sm:$0xff]  }
   0xc   :  { %996 = vmatpush3.bf16.msra.mxu0 %v1064_v9  ;;  %v1087_v31 = vld [vmem:[%s1393_s1 + $0xc0] sm:$0xff]   ;;  %v1095_v35 = vld [vmem:[%s1394_s0 + $0x2c] ss:$16 sps:$4 sm:$0xff]   ;;  %v1097_v38 = vld [vmem:[%s1394_s0 + $0x28] ss:$16 sps:$4 sm:$0xff]  }
   0xd   :  { %997 = vmatprep.subr.bf16.mxu0 %v1066_v11  ;;  %v1092_v33 = vld [vmem:[%s1394_s0 + $0x44] ss:$16 sps:$4 sm:$0xff]   ;;  %v1094_v36 = vld [vmem:[%s1394_s0 + $0x40] ss:$16 sps:$4 sm:$0xff]   ;;  %v1101_v39 = vld [vmem:[%s1394_s0 + $0x4c] ss:$16 sps:$4 sm:$0xff]  }
   0xe   :  { %580 = vmatpush1.bf16.msra.mxu1 %v1065_v10  ;;  %v1098_v37 = vld [vmem:[%s1394_s0 + $0x64] ss:$16 sps:$4 sm:$0xff]   ;;  %v1100_v40 = vld [vmem:[%s1394_s0 + $0x60] ss:$16 sps:$4 sm:$0xff]   ;;  %v1103_v42 = vld [vmem:[%s1394_s0 + $0x48] ss:$16 sps:$4 sm:$0xff]  }
   0xf   :  { %581 = vmatprep.subr.bf16.mxu1 %v1131_v0  ;;  %v1104_v41 = vld [vmem:[%s1394_s0 + $0x84] ss:$16 sps:$4 sm:$0xff]   ;;  %v1107_v43 = vld [vmem:[%s1394_s0 + $0x6c] ss:$16 sps:$4 sm:$0xff]   ;;  %v1106_v44 = vld [vmem:[%s1394_s0 + $0x80] ss:$16 sps:$4 sm:$0xff]  }
  0x10   :  { %998 = vmatpush3.bf16.msra.mxu0 %v1067_v12  ;;  %v1110_v45 = vld [vmem:[%s1394_s0 + $0xa4] ss:$16 sps:$4 sm:$0xff]   ;;  %v1109_v46 = vld [vmem:[%s1394_s0 + $0x68] ss:$16 sps:$4 sm:$0xff]   ;;  %v1113_v47 = vld [vmem:[%s1394_s0 + $0x8c] ss:$16 sps:$4 sm:$0xff]  }
  0x11   :  { %999 = vmatprep.subr.bf16.mxu0 %v1069_v13  ;;  %v1112_v48 = vld [vmem:[%s1394_s0 + $0xa0] ss:$16 sps:$4 sm:$0xff]   ;;  %v1116_v49 = vld [vmem:[%s1394_s0 + $0xc4] ss:$16 sps:$4 sm:$0xff]   ;;  %v1115_v50 = vld [vmem:[%s1394_s0 + $0x88] ss:$16 sps:$4 sm:$0xff]  }
  0x12   :  { %582 = vmatpush1.bf16.msra.mxu1 %v1068_v14  ;;  %v1119_v51 = vld [vmem:[%s1394_s0 + $0xac] ss:$16 sps:$4 sm:$0xff]   ;;  %v1118_v52 = vld [vmem:[%s1394_s0 + $0xc0] ss:$16 sps:$4 sm:$0xff]   ;;  %v1122_v53 = vld [vmem:[%s1394_s0 + $0xe4] ss:$16 sps:$4 sm:$0xff]  }
  0x13   :  { %583 = vmatprep.subr.bf16.mxu1 %v1131_v0  ;;  %v1121_v54 = vld [vmem:[%s1394_s0 + $0xa8] ss:$16 sps:$4 sm:$0xff]   ;;  %v1125_v55 = vld [vmem:[%s1394_s0 + $0xcc] ss:$16 sps:$4 sm:$0xff]   ;;  %v1124_v56 = vld [vmem:[%s1394_s0 + $0xe0] ss:$16 sps:$4 sm:$0xff]  }
  0x14   :  { %1000 = vmatpush3.bf16.msra.mxu0 %v1070_v15  ;;  %v1127_v57 = vld [vmem:[%s1394_s0 + $0xc8] ss:$16 sps:$4 sm:$0xff]   ;;  %v1128_v58 = vld [vmem:[%s1394_s0 + $0xec] ss:$16 sps:$4 sm:$0xff]   ;;  %v1351_v5 = vld [vmem:[%s1395_s2] ss:$0 sm:$0xff] }
  0x15   :  { %1001 = vmatprep.subr.bf16.mxu0 %v1072_v16  ;;  %v1130_v59 = vld [vmem:[%s1394_s0 + $0xe8] ss:$16 sps:$4 sm:$0xff]  }
  0x16   :  { %584 = vmatpush1.bf16.msra.mxu1 %v1071_v17 }
  0x17   :  { %585 = vmatprep.subr.bf16.mxu1 %v1131_v0 }
  0x18   :  { %1002 = vmatpush3.bf16.msra.mxu0 %v1073_v18 }
  0x19   :  { %1003 = vmatprep.subr.bf16.mxu0 %v1075_v19 }
  0x1a   :  { %586 = vmatpush1.bf16.msra.mxu1 %v1074_v20 }
  0x1b   :  { %587 = vmatprep.subr.bf16.mxu1 %v1131_v0 }
  0x1c   :  { %1004 = vmatpush3.bf16.msra.mxu0 %v1076_v21 }
  0x1d   :  { %1005 = vmatprep.subr.bf16.mxu0 %v1078_v22 }
  0x1e   :  { %588 = vmatpush1.bf16.msra.mxu1 %v1077_v24 }
  0x1f   :  { %599 = vmatprep.subr.bf16.mxu1 %v1131_v0 }
  0x20   :  { %1006 = vmatpush3.bf16.msra.mxu0 %v1079_v25 }
  0x22   :  { %600 = vmatpush2.bf16.msra.mxu1 %v1083_v26 }
  0x23   :  { %509 = vmatmul.mubr.bf16.vlgmr.msra.gmra.mxu0 %v1080_v28  ;;  %601 = vmatprep.subr.bf16.mxu1 %v1131_v0 }
  0x24   :  { %516 = vmatprep.mubr.bf16.mxu0 %v1085_v29 }
  0x26   :  { %602 = vmatpush2.bf16.msra.mxu1 %v1084_v30 }
  0x27   :  { %603 = vmatprep.subr.bf16.mxu1 %v1131_v0 }
  0x2a   :  { %604 = vmatpush2.bf16.msra.mxu1 %v1087_v31 }
  0x2b   :  { %517 = vmatmul.mubr.bf16.gmra.mxu0 %v1088_v32 }
  0x2c   :  { %524 = vmatprep.mubr.bf16.mxu0 %v1092_v33 }
  0x2d   :  { %606 = vmatmul.mubr.bf16.vlgmr.msra.gmra.mxu1 %v1089_v34 }
  0x2e   :  { %904 = vmatprep.mubr.msk.bf16.mxu1 %vm451_vm0, %v1095_v35 }
  0x33   :  { %525 = vmatmul.mubr.bf16.gmra.mxu0 %v1094_v36 }
  0x34   :  { %532 = vmatprep.mubr.bf16.mxu0 %v1098_v37 }
  0x35   :  { %614 = vmatmul.mubr.bf16.gmra.mxu1 %v1097_v38 }
  0x36   :  { %905 = vmatprep.mubr.msk.bf16.mxu1 %vm451_vm0, %v1101_v39 }
  0x3b   :  { %533 = vmatmul.mubr.bf16.gmra.mxu0 %v1100_v40 }
  0x3c   :  { %540 = vmatprep.mubr.bf16.mxu0 %v1104_v41 }
  0x3d   :  { %622 = vmatmul.mubr.bf16.gmra.mxu1 %v1103_v42 }
  0x3e   :  { %906 = vmatprep.mubr.msk.bf16.mxu1 %vm451_vm0, %v1107_v43 }
  0x43   :  { %541 = vmatmul.mubr.bf16.gmra.mxu0 %v1106_v44 }
  0x44   :  { %548 = vmatprep.mubr.bf16.mxu0 %v1110_v45 }
  0x45   :  { %630 = vmatmul.mubr.bf16.gmra.mxu1 %v1109_v46 }
  0x46   :  { %907 = vmatprep.mubr.msk.bf16.mxu1 %vm451_vm0, %v1113_v47 }
  0x4b   :  { %549 = vmatmul.mubr.bf16.gmra.mxu0 %v1112_v48 }
  0x4c   :  { %556 = vmatprep.mubr.bf16.mxu0 %v1116_v49 }
  0x4d   :  { %638 = vmatmul.mubr.bf16.gmra.mxu1 %v1115_v50 }
  0x4e   :  { %908 = vmatprep.mubr.msk.bf16.mxu1 %vm451_vm0, %v1119_v51 }
  0x53   :  { %557 = vmatmul.mubr.bf16.gmra.mxu0 %v1118_v52 }
  0x54   :  { %564 = vmatprep.mubr.bf16.mxu0 %v1122_v53 }
  0x55   :  { %646 = vmatmul.mubr.bf16.gmra.mxu1 %v1121_v54 }
  0x56   :  { %909 = vmatprep.mubr.msk.bf16.mxu1 %vm451_vm0, %v1125_v55 }
  0x5b   :  { %565 = vmatmul.mubr.bf16.gmra.mxu0 %v1124_v56 }
  0x5d   :  { %654 = vmatmul.mubr.bf16.gmra.mxu1 %v1127_v57 }
  0x5e   :  { %910 = vmatprep.mubr.msk.bf16.mxu1 %vm451_vm0, %v1128_v58 }
  0x65   :  { %662 = vmatmul.mubr.bf16.gmra.mxu1 %v1130_v59 }
  0xe3   :  { %v1007_v60 = vpop.f32.mrf.mxu0 }
  0xe5   :  { %v1008_v61 = vpop.f32.mrf.mxu0 }
  0xe6   :  { %v1009_v1 = vadd.f32 %v1008_v61, %v1007_v60 }
  0xe7   :  { %v1010_v62 = vpop.f32.mrf.mxu0 }
  0xe9   :  { %v1011_v63 = vpop.f32.mrf.mxu0 }
  0xea   :  { %v1012_v8 = vadd.f32 %v1011_v63, %v1010_v62 }
  0xeb   :  { %v1013_v0 = vpop.f32.mrf.mxu0 }
  0xed   :  { %v1014_v2 = vpop.f32.mrf.mxu0  ;;  %v607_v3 = vpop.f32.mrf.mxu1 }
  0xee   :  { %v608_v4 = vadd.f32 %v1009_v1, %v607_v3  ;;  %v1015_v15 = vadd.f32 %v1014_v2, %v1013_v0 }
  0xef   :  { %v1016_v6 = vpop.f32.mrf.mxu0  ;;  %v609_v7 = vpop.f32.mrf.mxu1 }
  0xf0   :  { %v728_v11 = vadd.f32 %v1351_v5, %v608_v4 }
  0xf1   :  { %v1017_v9 = vpop.f32.mrf.mxu0  ;;  %v610_v10 = vpop.f32.mrf.mxu1 }
  0xf2   :  { %v611_v12 = vadd.f32 %v1012_v8, %v610_v10  ;;  %v744_v19 = vmax.f32 %v728_v11, 0.0  ;;  %v1018_v24 = vadd.f32 %v1017_v9, %v1016_v6 }
  0xf3   :  { %v1019_v13 = vpop.f32.mrf.mxu0  ;;  %v612_v14 = vpop.f32.mrf.mxu1 }
  0xf4   :  { %v729_v16 = vadd.f32 %v1351_v5, %v611_v12 }
  0xf5   :  { %v1020_v17 = vpop.f32.mrf.mxu0  ;;  %v615_v18 = vpop.f32.mrf.mxu1 }
  0xf6   :  { %v745_v20 = vmax.f32 %v729_v16, 0.0  ;;  %v616_v21 = vadd.f32 %v1015_v15, %v615_v18  ;;  %v1021_v32 = vadd.f32 %v1020_v17, %v1019_v13 }
  0xf7   :  { %v1022_v22 = vpop.f32.mrf.mxu0  ;;  %v617_v23 = vpop.f32.mrf.mxu1 }
  0xf8   :  { %v947_v25 = vpack.c.bf16 %v745_v20, %v744_v19  ;;  %v730_v28 = vadd.f32 %v1351_v5, %v616_v21 }
  0xf9   :  { %v1023_v26 = vpop.f32.mrf.mxu0  ;;  %v618_v27 = vpop.f32.mrf.mxu1 }
  0xfa   :  { %948 = vst [vmem:[%s1396_s3] sm:$0xff] %v947_v25   ;;  %v619_v29 = vadd.f32 %v1018_v24, %v618_v27  ;;  %v746_v36 = vmax.f32 %v730_v28, 0.0  ;;  %v1024_v41 = vadd.f32 %v1023_v26, %v1022_v22 }
  0xfb   :  { %v1025_v30 = vpop.f32.mrf.mxu0  ;;  %v620_v31 = vpop.f32.mrf.mxu1 }
  0xfc   :  { %v731_v33 = vadd.f32 %v1351_v5, %v619_v29 }
  0xfd   :  { %v1026_v34 = vpop.f32.mrf.mxu0  ;;  %v623_v35 = vpop.f32.mrf.mxu1 }
  0xfe   :  { %v747_v37 = vmax.f32 %v731_v33, 0.0  ;;  %v624_v38 = vadd.f32 %v1021_v32, %v623_v35  ;;  %v1027_v49 = vadd.f32 %v1026_v34, %v1025_v30 }
  0xff   :  { %v1028_v39 = vpop.f32.mrf.mxu0  ;;  %v625_v40 = vpop.f32.mrf.mxu1 }
 0x100   :  { %v952_v42 = vpack.c.bf16 %v747_v37, %v746_v36  ;;  %v732_v45 = vadd.f32 %v1351_v5, %v624_v38 }
 0x101   :  { %v1029_v43 = vpop.f32.mrf.mxu0  ;;  %v626_v44 = vpop.f32.mrf.mxu1 }
 0x102   :  { %984 = vst [vmem:[%s1396_s3 + $0x8] sm:$0xff] %v952_v42   ;;  %v627_v46 = vadd.f32 %v1024_v41, %v626_v44  ;;  %v748_v53 = vmax.f32 %v732_v45, 0.0  ;;  %v1030_v58 = vadd.f32 %v1029_v43, %v1028_v39 }
 0x103   :  { %v1031_v47 = vpop.f32.mrf.mxu0  ;;  %v628_v48 = vpop.f32.mrf.mxu1 }
 0x104   :  { %v733_v50 = vadd.f32 %v1351_v5, %v627_v46 }
 0x105   :  { %v1032_v51 = vpop.f32.mrf.mxu0  ;;  %v631_v52 = vpop.f32.mrf.mxu1 }
 0x106   :  { %v749_v54 = vmax.f32 %v733_v50, 0.0  ;;  %v632_v55 = vadd.f32 %v1027_v49, %v631_v52  ;;  %v1033_v2 = vadd.f32 %v1032_v51, %v1031_v47 }
 0x107   :  { %v1034_v56 = vpop.f32.mrf.mxu0  ;;  %v633_v57 = vpop.f32.mrf.mxu1 }
 0x108   :  { %v957_v59 = vpack.c.bf16 %v749_v54, %v748_v53  ;;  %v734_v62 = vadd.f32 %v1351_v5, %v632_v55 }
 0x109   :  { %v1035_v60 = vpop.f32.mrf.mxu0  ;;  %v634_v61 = vpop.f32.mrf.mxu1 }
 0x10a   :  { %985 = vst [vmem:[%s1396_s3 + $0x10] sm:$0xff] %v957_v59   ;;  %v635_v63 = vadd.f32 %v1030_v58, %v634_v61  ;;  %v750_v7 = vmax.f32 %v734_v62, 0.0  ;;  %v1036_v12 = vadd.f32 %v1035_v60, %v1034_v56 }
 0x10b   :  { %v1037_v0 = vpop.f32.mrf.mxu0  ;;  %v636_v1 = vpop.f32.mrf.mxu1 }
 0x10c   :  { %v735_v3 = vadd.f32 %v1351_v5, %v635_v63 }
 0x10d   :  { %v1038_v4 = vpop.f32.mrf.mxu0  ;;  %v639_v6 = vpop.f32.mrf.mxu1 }
 0x10e   :  { %v751_v8 = vmax.f32 %v735_v3, 0.0  ;;  %v640_v9 = vadd.f32 %v1033_v2, %v639_v6  ;;  %v1039_v20 = vadd.f32 %v1038_v4, %v1037_v0 }
 0x10f   :  { %v1040_v10 = vpop.f32.mrf.mxu0  ;;  %v641_v11 = vpop.f32.mrf.mxu1 }
 0x110   :  { %v962_v13 = vpack.c.bf16 %v751_v8, %v750_v7  ;;  %v736_v16 = vadd.f32 %v1351_v5, %v640_v9 }
 0x111   :  { %v1041_v14 = vpop.f32.mrf.mxu0  ;;  %v642_v15 = vpop.f32.mrf.mxu1 }
 0x112   :  { %986 = vst [vmem:[%s1396_s3 + $0x18] sm:$0xff] %v962_v13   ;;  %v643_v17 = vadd.f32 %v1036_v12, %v642_v15  ;;  %v752_v24 = vmax.f32 %v736_v16, 0.0  ;;  %v1042_v29 = vadd.f32 %v1041_v14, %v1040_v10 }
 0x113   :  { %v1043_v18 = vpop.f32.mrf.mxu0  ;;  %v644_v19 = vpop.f32.mrf.mxu1 }
 0x114   :  { %v737_v21 = vadd.f32 %v1351_v5, %v643_v17 }
 0x115   :  { %v1044_v22 = vpop.f32.mrf.mxu0  ;;  %v647_v23 = vpop.f32.mrf.mxu1 }
 0x116   :  { %v753_v25 = vmax.f32 %v737_v21, 0.0  ;;  %v648_v26 = vadd.f32 %v1039_v20, %v647_v23  ;;  %v1045_v37 = vadd.f32 %v1044_v22, %v1043_v18 }
 0x117   :  { %v1046_v27 = vpop.f32.mrf.mxu0  ;;  %v649_v28 = vpop.f32.mrf.mxu1 }
 0x118   :  { %v967_v30 = vpack.c.bf16 %v753_v25, %v752_v24  ;;  %v738_v33 = vadd.f32 %v1351_v5, %v648_v26 }
 0x119   :  { %v1047_v31 = vpop.f32.mrf.mxu0  ;;  %v650_v32 = vpop.f32.mrf.mxu1 }
 0x11a   :  { %987 = vst [vmem:[%s1396_s3 + $0x20] sm:$0xff] %v967_v30   ;;  %v651_v34 = vadd.f32 %v1042_v29, %v650_v32  ;;  %v754_v41 = vmax.f32 %v738_v33, 0.0  ;;  %v1048_v45 = vadd.f32 %v1047_v31, %v1046_v27 }
 0x11b   :  { %v1049_v35 = vpop.f32.mrf.mxu0  ;;  %v652_v36 = vpop.f32.mrf.mxu1 }
 0x11c   :  { %v739_v38 = vadd.f32 %v1351_v5, %v651_v34 }
 0x11d   :  { %v1050_v39 = vpop.f32.mrf.mxu0  ;;  %v655_v40 = vpop.f32.mrf.mxu1 }
 0x11e   :  { %v755_v42 = vmax.f32 %v739_v38, 0.0  ;;  %v656_v43 = vadd.f32 %v1045_v37, %v655_v40  ;;  %v1051_v52 = vadd.f32 %v1050_v39, %v1049_v35 }
 0x11f   :  { %v657_v44 = vpop.f32.mrf.mxu1  ;;  %v1052_v47 = vpop.f32.mrf.mxu0 }
 0x120   :  { %v972_v46 = vpack.c.bf16 %v755_v42, %v754_v41  ;;  %v740_v49 = vadd.f32 %v1351_v5, %v656_v43 }
 0x121   :  { %v658_v48 = vpop.f32.mrf.mxu1  ;;  %v1053_v54 = vpop.f32.mrf.mxu0 }
 0x122   :  { %988 = vst [vmem:[%s1396_s3 + $0x28] sm:$0xff] %v972_v46   ;;  %v659_v50 = vadd.f32 %v1048_v45, %v658_v48  ;;  %v756_v56 = vmax.f32 %v740_v49, 0.0  ;;  %v1054_v60 = vadd.f32 %v1053_v54, %v1052_v47 }
 0x123   :  { %v660_v51 = vpop.f32.mrf.mxu1 }
 0x124   :  { %v741_v53 = vadd.f32 %v1351_v5, %v659_v50 }
 0x125   :  { %v663_v55 = vpop.f32.mrf.mxu1 }
 0x126   :  { %v757_v57 = vmax.f32 %v741_v53, 0.0  ;;  %v664_v58 = vadd.f32 %v1051_v52, %v663_v55 }
 0x127   :  { %v665_v59 = vpop.f32.mrf.mxu1 }
 0x128   :  { %v977_v61 = vpack.c.bf16 %v757_v57, %v756_v56  ;;  %v742_v63 = vadd.f32 %v1351_v5, %v664_v58 }
 0x129   :  { %v666_v62 = vpop.f32.mrf.mxu1 }
 0x12a   :  { %989 = vst [vmem:[%s1396_s3 + $0x30] sm:$0xff] %v977_v61   ;;  %v667_v0 = vadd.f32 %v1054_v60, %v666_v62  ;;  %v758_v3 = vmax.f32 %v742_v63, 0.0 }
 0x12b   :  { %v668_v1 = vpop.f32.mrf.mxu1 }
 0x12c   :  { %v743_v2 = vadd.f32 %v1351_v5, %v667_v0 }
 0x12e   :  { %v759_v4 = vmax.f32 %v743_v2, 0.0 }
 0x130   :  { %v982_v6 = vpack.c.bf16 %v759_v4, %v758_v3 }
 0x132   :  { %990 = vst [vmem:[%s1396_s3 + $0x38] sm:$0xff] %v982_v6  }

// kernel: lung_net_forward.7
= control target key start
LH: loop header
LB: loop body
LE: loop exit
PB: predicated region body
PF: predicated region fallthrough
CT: control target
= control target key end

     0   :  { %v471_v1 = vmov 0   ;;  %vm97_vm0 = vcmask 523264   ;;  %v274_v42 = vlaneseq  ;;  %s626_s6 = inlined_call_operand.vmem [shape: bf16[64,128], index: 6, kind: input, shape index: {}]   ;;  %s627_s0 = inlined_call_operand.vmem [shape: bf16[32,64], index: 0, kind: input, shape index: {}]   ;;  %s628_s1 = inlined_call_operand.vmem [shape: bf16[32,64], index: 1, kind: input, shape index: {}]   ;;  %s629_s2 = inlined_call_operand.vmem [shape: f32[32,1], index: 2, kind: input, shape index: {}]   ;;  %s630_s3 = inlined_call_operand.vmem [shape: f32[32,1], index: 3, kind: input, shape index: {}]   ;;  %s631_s5 = inlined_call_operand.vmem [shape: f32[32,128], index: 5, kind: input, shape index: {}]   ;;  %s632_s4 = inlined_call_operand.vmem [shape: f32[32,128], index: 4, kind: input, shape index: {}]   ;;  %s633_s7 = inlined_call_operand.vmem [shape: f32[32,128], index: 7, kind: output, shape index: {}]  }
   0x1   :  { %v439_v0 = vld [vmem:[%s626_s6 + $0x18] sm:$0xff]   ;;  %437 = vset.pattern.permute.xlu0 %v471_v1  ;;  %438 = vset.pattern.permute.xlu1 %v471_v1  ;;  %v440_v2 = vld [vmem:[%s626_s6 + $0x10] sm:$0xff]   ;;  %v441_v3 = vld [vmem:[%s626_s6 + $0x8] sm:$0xff]  }
   0x2   :  { %411 = vmatprep.subr.bf16.mxu0 %v439_v0  ;;  %423 = vmatprep.subr.bf16.mxu1 %v439_v0  ;;  %v443_v4 = vld [vmem:[%s627_s0] sm:$0xff]   ;;  %v41_v8 = vld [vmem:[%s629_s2 + $0x10] sm:$0xff]  ;;  %v40_v9 = vld [vmem:[%s629_s2 + $0x8] sm:$0xff]  ;;  %v275_v49 = vshrl.u32 %v274_v42, 7 }
   0x3   :  { %412 = vmatpush3.bf16.msra.mxu0 %v439_v0  ;;  %424 = vmatpush3.bf16.msra.mxu1 %v439_v0  ;;  %v444_v5 = vld [vmem:[%s628_s1] sm:$0xff]   ;;  %v42_v10 = vld [vmem:[%s629_s2 + $0x18] sm:$0xff]  ;;  %v445_v11 = vld [vmem:[%s627_s0 + $0x8] sm:$0xff]  }
   0x4   :  { %413 = vmatprep.subr.bf16.mxu0 %v440_v2  ;;  %425 = vmatprep.subr.bf16.mxu1 %v440_v2  ;;  %v442_v6 = vld [vmem:[%s626_s6] sm:$0xff]   ;;  %v446_v12 = vld [vmem:[%s628_s1 + $0x8] sm:$0xff]   ;;  %v159_v15 = vld [vmem:[%s630_s3 + $0x10] sm:$0xff]  ;;  %v277_v51 = vadd.s32 16, %v275_v49  ;;  %v577_v56 = vadd.s32 24, %v275_v49  ;;  %v283_v58 = vand.u32 7, %v275_v49 }
   0x5   :  { %419 = vmatprep.mubr.msk.bf16.mxu0 %vm97_vm0, %v443_v4  ;;  %v39_v7 = vld [vmem:[%s629_s2] sm:$0xff]  ;;  %431 = vmatprep.mubr.msk.bf16.mxu1 %vm97_vm0, %v444_v5  ;;  %v158_v14 = vld [vmem:[%s630_s3 + $0x8] sm:$0xff]  ;;  %v160_v16 = vld [vmem:[%s630_s3 + $0x18] sm:$0xff]  ;;  %v276_v60 = vadd.s32 8, %v275_v49  ;;  %v472_v4 = vmov 0.5  }
   0x6   :  { %45 = vperm.xlu0 %437, %v39_v7   ;;  %55 = vperm.xlu1 %438, %v41_v8   ;;  %v157_v13 = vld [vmem:[%s630_s3] sm:$0xff]  ;;  %v297_v54 = vand.u32 7, %v277_v51  ;;  %v252_v63 = vld [vmem:[%s631_s5 + $0x10] sm:$0xff]  ;;  %v304_v1 = vand.u32 7, %v577_v56  ;;  %vm327_vm2 = vcmp.lt.s32.totalorder %v283_v58, 3  ;;  %vm343_vm6 = vcmp.eq.s32.totalorder %v283_v58, 6 }
   0x7   :  { %414 = vmatpush3.bf16.msra.mxu0 %v440_v2  ;;  %426 = vmatpush3.bf16.msra.mxu1 %v440_v2  ;;  %v290_v8 = vand.u32 7, %v276_v60 }
   0x8   :  { %415 = vmatprep.subr.bf16.mxu0 %v441_v3  ;;  %427 = vmatprep.subr.bf16.mxu1 %v441_v3  ;;  %vm329_vm1 = vcmp.lt.s32.totalorder %v297_v54, 3  ;;  %vm330_vm3 = vcmp.lt.s32.totalorder %v304_v1, 3  ;;  %vm600_vm5 = vcmp.eq.s32.totalorder %v297_v54, 6  ;;  %vm346_vm7 = vcmp.eq.s32.totalorder %v304_v1, 6 }
   0x9   :  { %v333_v5 = vsel %vm329_vm1, -0.5, %v472_v4  ;;  %vm328_vm4 = vcmp.lt.s32.totalorder %v290_v8, 3  ;;  %vm344_vm8 = vcmp.eq.s32.totalorder %v290_v8, 6 }
   0xa   :  { %50 = vperm.xlu0 %437, %v40_v9   ;;  %60 = vperm.xlu1 %438, %v42_v10  }
   0xb   :  { %416 = vmatpush3.bf16.msra.mxu0 %v441_v3  ;;  %428 = vmatpush3.bf16.msra.mxu1 %v441_v3 }
   0xc   :  { %417 = vmatprep.subr.bf16.mxu0 %v442_v6  ;;  %429 = vmatprep.subr.bf16.mxu1 %v442_v6 }
   0xe   :  { %163 = vperm.xlu0 %437, %v157_v13   ;;  %168 = vperm.xlu1 %438, %v158_v14   ;;  %v331_v13 = vsel %vm327_vm2, -0.5, %v472_v4 }
   0xf   :  { %418 = vmatpush3.bf16.msra.mxu0 %v442_v6  ;;  %430 = vmatpush3.bf16.msra.mxu1 %v442_v6  ;;  %v250_v6 = vld [vmem:[%s631_s5] sm:$0xff] }
  0x12   :  { %420 = vmatmul.mubr.msk.bf16.vlgmr.msra.gmra.mxu0 %vm97_vm0, %v445_v11  ;;  %432 = vmatmul.mubr.msk.bf16.vlgmr.msra.gmra.mxu1 %vm97_vm0, %v446_v12  ;;  %v248_v12 = vld [vmem:[%s632_s4 + $0x10] sm:$0xff] }
  0x13   :  { %173 = vperm.xlu0 %437, %v159_v15   ;;  %178 = vperm.xlu1 %438, %v160_v16  }
  0x81   :  { %v46_v17 = vpop.permute.xlu0 %45  ;;  %v56_v19 = vpop.permute.xlu1 %55 }
  0x85   :  { %v51_v18 = vpop.permute.xlu0 %50  ;;  %v61_v21 = vpop.permute.xlu1 %60 }
  0x89   :  { %v164_v20 = vpop.permute.xlu0 %163  ;;  %v169_v23 = vpop.permute.xlu1 %168 }
  0x8e   :  { %v174_v22 = vpop.permute.xlu0 %173  ;;  %v179_v36 = vpop.permute.xlu1 %178 }
  0xd2   :  { %v421_v24 = vpop.f32.mrf.mxu0  ;;  %v433_v25 = vpop.f32.mrf.mxu1 }
  0xd3   :  { %v565_v26 = vadd.f32 %v421_v24, %v56_v19  ;;  %v240_v27 = vadd.f32 %v433_v25, %v174_v22  ;;  %v334_v22 = vsel %vm330_vm3, -0.5, %v472_v4 }
  0xd4   :  { %v138_v28 = vpop.f32.mrf.mxu0  ;;  %v231_v29 = vpop.f32.mrf.mxu1 }
  0xd5   :  { %v397_v30 = vmul.f32 -1.442695, %v565_v26  ;;  %v568_v31 = vadd.f32 %v138_v28, %v46_v17  ;;  %v232_v32 = vadd.f32 %v231_v29, %v164_v20  ;;  %v266_v35 = vmul.f32 1.442695, %v240_v27  ;;  %v253_v17 = vld [vmem:[%s631_s5 + $0x18] sm:$0xff] }
  0xd6   :  { %v422_v33 = vpop.f32.mrf.mxu0  ;;  %v434_v34 = vpop.f32.mrf.mxu1  ;;  %v256_v10 = vmul.f32 %v252_v63, %v565_v26  ;;  %v249_v29 = vld [vmem:[%s632_s4 + $0x18] sm:$0xff] }
  0xd7   :  { %447 = vpow2.f32 %v397_v30  ;;  %v395_v37 = vmul.f32 -1.442695, %v568_v31  ;;  %v571_v38 = vadd.f32 %v422_v33, %v61_v21  ;;  %v243_v39 = vadd.f32 %v434_v34, %v179_v36  ;;  %v247_v36 = vld [vmem:[%s632_s4 + $0x8] sm:$0xff] }
  0xd8   :  { %v141_v40 = vpop.f32.mrf.mxu0  ;;  %v234_v41 = vpop.f32.mrf.mxu1  ;;  %v262_v43 = vmul.f32 1.442695, %v232_v32  ;;  %v254_v16 = vmul.f32 %v250_v6, %v568_v31  ;;  %v260_v20 = vadd.f32 %v256_v10, %v248_v12  ;;  %v332_v30 = vsel %vm328_vm4, -0.5, %v472_v4 }
  0xd9   :  { %449 = vpow2.f32 %v395_v37  ;;  %v573_v44 = vadd.f32 %v141_v40, %v51_v18  ;;  %v398_v45 = vmul.f32 -1.442695, %v571_v38  ;;  %v235_v46 = vadd.f32 %v234_v41, %v169_v23  ;;  %v246_v18 = vld [vmem:[%s632_s4] sm:$0xff]  ;;  %v251_v23 = vld [vmem:[%s631_s5 + $0x8] sm:$0xff] }
  0xda   :  { %451 = vpow2.f32 %v266_v35  ;;  %v268_v48 = vmul.f32 1.442695, %v243_v39  ;;  %v257_v25 = vmul.f32 %v253_v17, %v571_v38  ;;  %v258_v28 = vadd.f32 %v254_v16, %v246_v18 }
  0xdb   :  { %v396_v47 = vmul.f32 -1.442695, %v573_v44  ;;  %453 = vpow2.f32 %v398_v45  ;;  %v264_v50 = vmul.f32 1.442695, %v235_v46  ;;  %v255_v33 = vmul.f32 %v251_v23, %v573_v44 }
  0xdc   :  { %455 = vpow2.f32 %v262_v43  ;;  %v261_v38 = vadd.f32 %v257_v25, %v249_v29 }
  0xdd   :  { %457 = vpow2.f32 %v396_v47  ;;  %v259_v42 = vadd.f32 %v255_v33, %v247_v36 }
  0xde   :  { %459 = vpow2.f32 %v268_v48 }
  0xdf   :  { %461 = vpow2.f32 %v264_v50 }
  0xe4   :  { %v448_v52 = vpop.eup %447 }
  0xe5   :  { %v361_v53 = vadd.f32 1.0, %v448_v52 }
  0xe6   :  { %v450_v55 = vpop.eup %449 }
  0xe7   :  { %463 = vrcp.f32 %v361_v53  ;;  %v359_v57 = vadd.f32 1.0, %v450_v55  ;;  %v452_v59 = vpop.eup %451 }
  0xe8   :  { %v454_v61 = vpop.eup %453  ;;  %v272_v3 = vmul.f32 %v452_v59, %v252_v63 }
  0xe9   :  { %465 = vrcp.f32 %v359_v57  ;;  %v456_v62 = vpop.eup %455  ;;  %v362_v0 = vadd.f32 1.0, %v454_v61 }
  0xea   :  { %v458_v2 = vpop.eup %457  ;;  %v270_v11 = vmul.f32 %v456_v62, %v250_v6  ;;  %v337_v15 = vmul.f32 %v333_v5, %v272_v3 }
  0xeb   :  { %467 = vrcp.f32 %v362_v0  ;;  %v360_v7 = vadd.f32 1.0, %v458_v2  ;;  %v460_v9 = vpop.eup %459 }
  0xec   :  { %v462_v14 = vpop.eup %461  ;;  %v273_v19 = vmul.f32 %v460_v9, %v253_v17  ;;  %v335_v21 = vmul.f32 %v331_v13, %v270_v11  ;;  %v341_v27 = vadd.f32 %v337_v15, %v260_v20 }
  0xed   :  { %469 = vrcp.f32 %v360_v7  ;;  %v271_v26 = vmul.f32 %v462_v14, %v251_v23 }
  0xee   :  { %v338_v32 = vmul.f32 %v334_v22, %v273_v19  ;;  %v339_v35 = vadd.f32 %v335_v21, %v258_v28 }
  0xef   :  { %v336_v39 = vmul.f32 %v332_v30, %v271_v26 }
  0xf0   :  { %v342_v41 = vadd.f32 %v338_v32, %v261_v38 }
  0xf1   :  { %v340_v45 = vadd.f32 %v336_v39, %v259_v42 }
  0xf4   :  { %v464_v31 = vpop.eup %463 }
  0xf5   :  { %v373_v34 = vsel %vm600_vm5, %v464_v31, %v341_v27 }
  0xf6   :  { %v466_v37 = vpop.eup %465  ;;  %377 = vst [vmem:[%s633_s7 + $0x10] sm:$0xff] %v373_v34 }
  0xf7   :  { %v371_v40 = vsel %vm343_vm6, %v466_v37, %v339_v35 }
  0xf8   :  { %375 = vst [vmem:[%s633_s7] sm:$0xff] %v371_v40  ;;  %v468_v43 = vpop.eup %467 }
  0xf9   :  { %v374_v44 = vsel %vm346_vm7, %v468_v43, %v342_v41 }
  0xfa   :  { %v470_v46 = vpop.eup %469  ;;  %378 = vst [vmem:[%s633_s7 + $0x18] sm:$0xff] %v374_v44 }
  0xfb   :  { %v372_v47 = vsel %vm344_vm8, %v470_v46, %v340_v45 }
  0xfc   :  { %376 = vst [vmem:[%s633_s7 + $0x8] sm:$0xff] %v372_v47 }

// kernel: lung_net_forward.8
= control target key start
LH: loop header
LB: loop body
LE: loop exit
PB: predicated region body
PF: predicated region fallthrough
CT: control target
= control target key end

     0   :  { %s1024_s1 = inlined_call_operand.vmem [shape: bf16[512,128], index: 1, kind: input, shape index: {}]   ;;  %s1025_s0 = inlined_call_operand.vmem [shape: bf16[64,512], index: 0, kind: input, shape index: {}]   ;;  %s1026_s2 = inlined_call_operand.vmem [shape: f32[1,128], index: 2, kind: input, shape index: {}]   ;;  %s1027_s3 = inlined_call_operand.vmem [shape: bf16[64,128], index: 3, kind: output, shape index: {}]  }
   0x1   :  { %v779_v0 = vld [vmem:[%s1024_s1 + $0x78] sm:$0xff]   ;;  %v783_v4 = vld [vmem:[%s1024_s1 + $0x70] sm:$0xff]   ;;  %v787_v8 = vld [vmem:[%s1024_s1 + $0x68] sm:$0xff]  }
   0x2   :  { %v780_v1 = vld [vmem:[%s1024_s1 + $0xf8] sm:$0xff]   ;;  %699 = vmatprep.subr.bf16.mxu0 %v779_v0  ;;  %v784_v5 = vld [vmem:[%s1024_s1 + $0xf0] sm:$0xff]   ;;  %v788_v9 = vld [vmem:[%s1024_s1 + $0xe8] sm:$0xff]  }
   0x3   :  { %v781_v2 = vld [vmem:[%s1024_s1 + $0x38] sm:$0xff]   ;;  %739 = vmatprep.subr.bf16.mxu1 %v780_v1  ;;  %v785_v6 = vld [vmem:[%s1024_s1 + $0x30] sm:$0xff]   ;;  %v789_v10 = vld [vmem:[%s1024_s1 + $0x28] sm:$0xff]  }
   0x4   :  { %v782_v3 = vld [vmem:[%s1024_s1 + $0xb8] sm:$0xff]   ;;  %700 = vmatpush3.bf16.msra.mxu0 %v781_v2  ;;  %v786_v7 = vld [vmem:[%s1024_s1 + $0xb0] sm:$0xff]   ;;  %v790_v11 = vld [vmem:[%s1024_s1 + $0xa8] sm:$0xff]  }
   0x5   :  { %740 = vmatpush3.bf16.msra.mxu1 %v782_v3  ;;  %701 = vmatprep.subr.bf16.mxu0 %v783_v4  ;;  %v791_v12 = vld [vmem:[%s1024_s1 + $0x60] sm:$0xff]   ;;  %v795_v16 = vld [vmem:[%s1024_s1 + $0x58] sm:$0xff]   ;;  %v799_v20 = vld [vmem:[%s1024_s1 + $0x50] sm:$0xff]  }
   0x6   :  { %741 = vmatprep.subr.bf16.mxu1 %v784_v5  ;;  %v792_v13 = vld [vmem:[%s1024_s1 + $0xe0] sm:$0xff]   ;;  %v796_v17 = vld [vmem:[%s1024_s1 + $0xd8] sm:$0xff]   ;;  %v800_v21 = vld [vmem:[%s1024_s1 + $0xd0] sm:$0xff]  }
   0x7   :  { %v793_v14 = vld [vmem:[%s1024_s1 + $0x20] sm:$0xff]   ;;  %v797_v18 = vld [vmem:[%s1024_s1 + $0x18] sm:$0xff]   ;;  %v801_v22 = vld [vmem:[%s1024_s1 + $0x10] sm:$0xff]  }
   0x8   :  { %702 = vmatpush3.bf16.msra.mxu0 %v785_v6  ;;  %v794_v15 = vld [vmem:[%s1024_s1 + $0xa0] sm:$0xff]   ;;  %v798_v19 = vld [vmem:[%s1024_s1 + $0x98] sm:$0xff]   ;;  %v802_v23 = vld [vmem:[%s1024_s1 + $0x90] sm:$0xff]  }
   0x9   :  { %742 = vmatpush3.bf16.msra.mxu1 %v786_v7  ;;  %703 = vmatprep.subr.bf16.mxu0 %v787_v8  ;;  %v803_v24 = vld [vmem:[%s1024_s1 + $0x48] sm:$0xff]   ;;  %v807_v28 = vld [vmem:[%s1024_s1 + $0x40] sm:$0xff]  }
   0xa   :  { %743 = vmatprep.subr.bf16.mxu1 %v788_v9  ;;  %v804_v25 = vld [vmem:[%s1024_s1 + $0xc8] sm:$0xff]   ;;  %v808_v29 = vld [vmem:[%s1024_s1 + $0xc0] sm:$0xff]  }
   0xb   :  { %v805_v26 = vld [vmem:[%s1024_s1 + $0x8] sm:$0xff]   ;;  %v809_v30 = vld [vmem:[%s1024_s1] sm:$0xff]  }
   0xc   :  { %704 = vmatpush3.bf16.msra.mxu0 %v789_v10  ;;  %v806_v27 = vld [vmem:[%s1024_s1 + $0x88] sm:$0xff]   ;;  %v810_v31 = vld [vmem:[%s1024_s1 + $0x80] sm:$0xff]  }
   0xd   :  { %744 = vmatpush3.bf16.msra.mxu1 %v790_v11  ;;  %705 = vmatprep.subr.bf16.mxu0 %v791_v12  ;;  %v811_v32 = vld [vmem:[%s1025_s0] ss:$16 sps:$4 sm:$0xff]   ;;  %v813_v33 = vld [vmem:[%s1025_s0 + $0x4] ss:$16 sps:$4 sm:$0xff]   ;;  %v814_v34 = vld [vmem:[%s1025_s0 + $0x8] ss:$16 sps:$4 sm:$0xff]  }
   0xe   :  { %745 = vmatprep.subr.bf16.mxu1 %v792_v13  ;;  %v816_v35 = vld [vmem:[%s1025_s0 + $0xc] ss:$16 sps:$4 sm:$0xff]   ;;  %419 = vmatprep.mubr.bf16.mxu0 %v813_v33  ;;  %v817_v36 = vld [vmem:[%s1025_s0 + $0x24] ss:$16 sps:$4 sm:$0xff]   ;;  %v821_v38 = vld [vmem:[%s1025_s0 + $0x20] ss:$16 sps:$4 sm:$0xff]  }
   0xf   :  { %484 = vmatprep.mubr.bf16.mxu1 %v816_v35  ;;  %v819_v37 = vld [vmem:[%s1025_s0 + $0x2c] ss:$16 sps:$4 sm:$0xff]   ;;  %v822_v39 = vld [vmem:[%s1025_s0 + $0x28] ss:$16 sps:$4 sm:$0xff]   ;;  %v823_v40 = vld [vmem:[%s1025_s0 + $0x44] ss:$16 sps:$4 sm:$0xff]  }
  0x10   :  { %706 = vmatpush3.bf16.msra.mxu0 %v793_v14  ;;  %v825_v41 = vld [vmem:[%s1025_s0 + $0x4c] ss:$16 sps:$4 sm:$0xff]   ;;  %v827_v42 = vld [vmem:[%s1025_s0 + $0x40] ss:$16 sps:$4 sm:$0xff]   ;;  %v828_v43 = vld [vmem:[%s1025_s0 + $0x48] ss:$16 sps:$4 sm:$0xff]  }
  0x11   :  { %746 = vmatpush3.bf16.msra.mxu1 %v794_v15  ;;  %707 = vmatprep.subr.bf16.mxu0 %v795_v16  ;;  %v829_v44 = vld [vmem:[%s1025_s0 + $0x64] ss:$16 sps:$4 sm:$0xff]   ;;  %v831_v45 = vld [vmem:[%s1025_s0 + $0x6c] ss:$16 sps:$4 sm:$0xff]   ;;  %v833_v46 = vld [vmem:[%s1025_s0 + $0x60] ss:$16 sps:$4 sm:$0xff]  }
  0x12   :  { %747 = vmatprep.subr.bf16.mxu1 %v796_v17  ;;  %v834_v47 = vld [vmem:[%s1025_s0 + $0x68] ss:$16 sps:$4 sm:$0xff]   ;;  %v1002_v58 = vld [vmem:[%s1026_s2] ss:$0 sm:$0xff] }
  0x14   :  { %708 = vmatpush3.bf16.msra.mxu0 %v797_v18 }
  0x15   :  { %748 = vmatpush3.bf16.msra.mxu1 %v798_v19  ;;  %709 = vmatprep.subr.bf16.mxu0 %v799_v20 }
  0x16   :  { %749 = vmatprep.subr.bf16.mxu1 %v800_v21 }
  0x18   :  { %710 = vmatpush3.bf16.msra.mxu0 %v801_v22 }
  0x19   :  { %750 = vmatpush3.bf16.msra.mxu1 %v802_v23  ;;  %711 = vmatprep.subr.bf16.mxu0 %v803_v24 }
  0x1a   :  { %751 = vmatprep.subr.bf16.mxu1 %v804_v25 }
  0x1c   :  { %712 = vmatpush3.bf16.msra.mxu0 %v805_v26 }
  0x1d   :  { %752 = vmatpush3.bf16.msra.mxu1 %v806_v27  ;;  %713 = vmatprep.subr.bf16.mxu0 %v807_v28 }
  0x1e   :  { %753 = vmatprep.subr.bf16.mxu1 %v808_v29 }
  0x20   :  { %714 = vmatpush3.bf16.msra.mxu0 %v809_v30 }
  0x21   :  { %754 = vmatpush3.bf16.msra.mxu1 %v810_v31 }
  0x23   :  { %420 = vmatmul.mubr.bf16.vlgmr.msra.gmra.mxu0 %v811_v32 }
  0x24   :  { %485 = vmatmul.mubr.bf16.vlgmr.msra.gmra.mxu1 %v814_v34  ;;  %427 = vmatprep.mubr.bf16.mxu0 %v817_v36 }
  0x25   :  { %492 = vmatprep.mubr.bf16.mxu1 %v819_v37 }
  0x2b   :  { %428 = vmatmul.mubr.bf16.gmra.mxu0 %v821_v38 }
  0x2c   :  { %493 = vmatmul.mubr.bf16.gmra.mxu1 %v822_v39  ;;  %435 = vmatprep.mubr.bf16.mxu0 %v823_v40 }
  0x2d   :  { %500 = vmatprep.mubr.bf16.mxu1 %v825_v41 }
  0x33   :  { %436 = vmatmul.mubr.bf16.gmra.mxu0 %v827_v42 }
  0x34   :  { %501 = vmatmul.mubr.bf16.gmra.mxu1 %v828_v43  ;;  %443 = vmatprep.mubr.bf16.mxu0 %v829_v44 }
  0x35   :  { %508 = vmatprep.mubr.bf16.mxu1 %v831_v45 }
  0x3b   :  { %444 = vmatmul.mubr.bf16.gmra.mxu0 %v833_v46 }
  0x3c   :  { %509 = vmatmul.mubr.bf16.gmra.mxu1 %v834_v47 }
  0xe3   :  { %v715_v48 = vpop.f32.mrf.mxu0 }
  0xe4   :  { %v755_v49 = vpop.f32.mrf.mxu1 }
  0xe5   :  { %v716_v50 = vpop.f32.mrf.mxu0 }
  0xe6   :  { %v717_v51 = vadd.f32 %v716_v50, %v715_v48  ;;  %v756_v52 = vpop.f32.mrf.mxu1 }
  0xe7   :  { %v757_v53 = vadd.f32 %v756_v52, %v755_v49  ;;  %v718_v54 = vpop.f32.mrf.mxu0 }
  0xe8   :  { %v758_v55 = vpop.f32.mrf.mxu1 }
  0xe9   :  { %v487_v56 = vadd.f32 %v757_v53, %v717_v51  ;;  %v719_v57 = vpop.f32.mrf.mxu0 }
  0xea   :  { %v720_v59 = vadd.f32 %v719_v57, %v718_v54  ;;  %v759_v60 = vpop.f32.mrf.mxu1 }
  0xeb   :  { %v760_v61 = vadd.f32 %v759_v60, %v758_v55  ;;  %v721_v62 = vpop.f32.mrf.mxu0  ;;  %v551_v0 = vadd.f32 %v1002_v58, %v487_v56 }
  0xec   :  { %v761_v63 = vpop.f32.mrf.mxu1 }
  0xed   :  { %v490_v1 = vadd.f32 %v760_v61, %v720_v59  ;;  %v722_v2 = vpop.f32.mrf.mxu0  ;;  %v559_v9 = vmax.f32 %v551_v0, 0.0 }
  0xee   :  { %v723_v3 = vadd.f32 %v722_v2, %v721_v62  ;;  %v762_v4 = vpop.f32.mrf.mxu1 }
  0xef   :  { %v552_v5 = vadd.f32 %v1002_v58, %v490_v1  ;;  %v763_v6 = vadd.f32 %v762_v4, %v761_v63  ;;  %v724_v7 = vpop.f32.mrf.mxu0 }
  0xf0   :  { %v764_v8 = vpop.f32.mrf.mxu1 }
  0xf1   :  { %v560_v10 = vmax.f32 %v552_v5, 0.0  ;;  %v495_v11 = vadd.f32 %v763_v6, %v723_v3  ;;  %v725_v12 = vpop.f32.mrf.mxu0 }
  0xf2   :  { %v726_v13 = vadd.f32 %v725_v12, %v724_v7  ;;  %v765_v14 = vpop.f32.mrf.mxu1 }
  0xf3   :  { %v679_v15 = vpack.c.bf16 %v560_v10, %v559_v9  ;;  %v766_v16 = vadd.f32 %v765_v14, %v764_v8  ;;  %v727_v17 = vpop.f32.mrf.mxu0  ;;  %v553_v19 = vadd.f32 %v1002_v58, %v495_v11 }
  0xf4   :  { %v767_v18 = vpop.f32.mrf.mxu1 }
  0xf5   :  { %680 = vst [vmem:[%s1027_s3] sm:$0xff] %v679_v15   ;;  %v498_v20 = vadd.f32 %v766_v16, %v726_v13  ;;  %v728_v21 = vpop.f32.mrf.mxu0  ;;  %v561_v28 = vmax.f32 %v553_v19, 0.0 }
  0xf6   :  { %v729_v22 = vadd.f32 %v728_v21, %v727_v17  ;;  %v768_v23 = vpop.f32.mrf.mxu1 }
  0xf7   :  { %v554_v24 = vadd.f32 %v1002_v58, %v498_v20  ;;  %v769_v25 = vadd.f32 %v768_v23, %v767_v18  ;;  %v730_v26 = vpop.f32.mrf.mxu0 }
  0xf8   :  { %v770_v27 = vpop.f32.mrf.mxu1 }
  0xf9   :  { %v562_v29 = vmax.f32 %v554_v24, 0.0  ;;  %v503_v30 = vadd.f32 %v769_v25, %v729_v22  ;;  %v731_v31 = vpop.f32.mrf.mxu0 }
  0xfa   :  { %v732_v32 = vadd.f32 %v731_v31, %v730_v26  ;;  %v771_v33 = vpop.f32.mrf.mxu1 }
  0xfb   :  { %v684_v34 = vpack.c.bf16 %v562_v29, %v561_v28  ;;  %v772_v35 = vadd.f32 %v771_v33, %v770_v27  ;;  %v733_v36 = vpop.f32.mrf.mxu0  ;;  %v555_v38 = vadd.f32 %v1002_v58, %v503_v30 }
  0xfc   :  { %v773_v37 = vpop.f32.mrf.mxu1 }
  0xfd   :  { %696 = vst [vmem:[%s1027_s3 + $0x8] sm:$0xff] %v684_v34   ;;  %v506_v39 = vadd.f32 %v772_v35, %v732_v32  ;;  %v734_v40 = vpop.f32.mrf.mxu0  ;;  %v563_v47 = vmax.f32 %v555_v38, 0.0 }
  0xfe   :  { %v735_v41 = vadd.f32 %v734_v40, %v733_v36  ;;  %v774_v42 = vpop.f32.mrf.mxu1 }
  0xff   :  { %v556_v43 = vadd.f32 %v1002_v58, %v506_v39  ;;  %v775_v44 = vadd.f32 %v774_v42, %v773_v37  ;;  %v736_v45 = vpop.f32.mrf.mxu0 }
 0x100   :  { %v776_v46 = vpop.f32.mrf.mxu1 }
 0x101   :  { %v564_v48 = vmax.f32 %v556_v43, 0.0  ;;  %v511_v49 = vadd.f32 %v775_v44, %v735_v41  ;;  %v737_v50 = vpop.f32.mrf.mxu0 }
 0x102   :  { %v738_v51 = vadd.f32 %v737_v50, %v736_v45  ;;  %v777_v52 = vpop.f32.mrf.mxu1 }
 0x103   :  { %v689_v53 = vpack.c.bf16 %v564_v48, %v563_v47  ;;  %v778_v54 = vadd.f32 %v777_v52, %v776_v46  ;;  %v557_v55 = vadd.f32 %v1002_v58, %v511_v49 }
 0x105   :  { %697 = vst [vmem:[%s1027_s3 + $0x10] sm:$0xff] %v689_v53   ;;  %v514_v56 = vadd.f32 %v778_v54, %v738_v51  ;;  %v565_v59 = vmax.f32 %v557_v55, 0.0 }
 0x107   :  { %v558_v57 = vadd.f32 %v1002_v58, %v514_v56 }
 0x109   :  { %v566_v60 = vmax.f32 %v558_v57, 0.0 }
 0x10b   :  { %v694_v61 = vpack.c.bf16 %v566_v60, %v565_v59 }
 0x10d   :  { %698 = vst [vmem:[%s1027_s3 + $0x18] sm:$0xff] %v694_v61  }

// kernel: lung_net_forward.9
= control target key start
LH: loop header
LB: loop body
LE: loop exit
PB: predicated region body
PF: predicated region fallthrough
CT: control target
= control target key end

     0   :  { %v617_v1 = vmov 0   ;;  %v305_v21 = vlaneseq  ;;  %s854_s1 = inlined_call_operand.vmem [shape: bf16[128,256], index: 1, kind: input, shape index: {}]   ;;  %s855_s0 = inlined_call_operand.vmem [shape: bf16[64,128], index: 0, kind: input, shape index: {}]   ;;  %s856_s2 = inlined_call_operand.vmem [shape: f32[1,256], index: 2, kind: input, shape index: {}]   ;;  %s857_s3 = inlined_call_operand.vmem [shape: f32[64,256], index: 3, kind: output, shape index: {}]  }
   0x1   :  { %v525_v0 = vld [vmem:[%s854_s1 + $0x74] ss:$8 sps:$4 sm:$0xff]   ;;  %211 = vmatprep.mubr.bf16.mxu0 %v617_v1  ;;  %231 = vmatprep.mubr.bf16.mxu1 %v617_v1  ;;  %v527_v2 = vld [vmem:[%s854_s1 + $0x70] ss:$8 sps:$4 sm:$0xff]   ;;  %v528_v3 = vld [vmem:[%s854_s1 + $0x64] ss:$8 sps:$4 sm:$0xff]  }
   0x2   :  { %179 = vmatprep.subr.bf16.mxu0 %v525_v0  ;;  %508 = vmatprep.subr.bf16.mxu1 %v525_v0  ;;  %v530_v4 = vld [vmem:[%s854_s1 + $0x60] ss:$8 sps:$4 sm:$0xff]   ;;  %v531_v5 = vld [vmem:[%s854_s1 + $0x54] ss:$8 sps:$4 sm:$0xff]   ;;  %v533_v6 = vld [vmem:[%s854_s1 + $0x50] ss:$8 sps:$4 sm:$0xff]  }
   0x3   :  { %180 = vmatpush1.bf16.msra.mxu0 %v527_v2  ;;  %516 = vmatpush1.bf16.msra.mxu1 %v527_v2  ;;  %v534_v7 = vld [vmem:[%s854_s1 + $0x44] ss:$8 sps:$4 sm:$0xff]   ;;  %v536_v8 = vld [vmem:[%s854_s1 + $0x40] ss:$8 sps:$4 sm:$0xff]   ;;  %v537_v9 = vld [vmem:[%s854_s1 + $0x34] ss:$8 sps:$4 sm:$0xff]  }
   0x4   :  { %181 = vmatprep.subr.bf16.mxu0 %v528_v3  ;;  %509 = vmatprep.subr.bf16.mxu1 %v528_v3  ;;  %v539_v10 = vld [vmem:[%s854_s1 + $0x30] ss:$8 sps:$4 sm:$0xff]   ;;  %v540_v11 = vld [vmem:[%s854_s1 + $0x24] ss:$8 sps:$4 sm:$0xff]   ;;  %v542_v12 = vld [vmem:[%s854_s1 + $0x20] ss:$8 sps:$4 sm:$0xff]  }
   0x5   :  { %v543_v13 = vld [vmem:[%s854_s1 + $0x14] ss:$8 sps:$4 sm:$0xff]   ;;  %v545_v14 = vld [vmem:[%s854_s1 + $0x10] ss:$8 sps:$4 sm:$0xff]   ;;  %v546_v15 = vld [vmem:[%s854_s1 + $0x4] ss:$8 sps:$4 sm:$0xff]  }
   0x6   :  { %v548_v16 = vld [vmem:[%s854_s1] ss:$8 sps:$4 sm:$0xff]   ;;  %v550_v18 = vld [vmem:[%s855_s0 + $0x10] sm:$0xff]   ;;  %v552_v20 = vld [vmem:[%s855_s0 + $0x18] sm:$0xff]   ;;  %v306_v22 = vshrl.u32 %v305_v21, 7 }
   0x7   :  { %182 = vmatpush1.bf16.msra.mxu0 %v530_v4  ;;  %517 = vmatpush1.bf16.msra.mxu1 %v530_v4  ;;  %v549_v17 = vld [vmem:[%s855_s0] sm:$0xff]   ;;  %v551_v19 = vld [vmem:[%s855_s0 + $0x8] sm:$0xff]  }
   0x8   :  { %183 = vmatprep.subr.bf16.mxu0 %v531_v5  ;;  %510 = vmatprep.subr.bf16.mxu1 %v531_v5  ;;  %v307_v23 = vsub.s32 0, %v306_v22  ;;  %v303_v24 = vld [vmem:[%s856_s2] sm:$0x3]  ;;  %v311_v25 = vsub.s32 1, %v306_v22 }
   0xa   :  { %v308_v26 = vrot.slane %v303_v24, %v307_v23  ;;  %v312_v27 = vrot.slane %v303_v24, %v311_v25 }
   0xb   :  { %184 = vmatpush1.bf16.msra.mxu0 %v533_v6  ;;  %518 = vmatpush1.bf16.msra.mxu1 %v533_v6 }
   0xc   :  { %185 = vmatprep.subr.bf16.mxu0 %v534_v7  ;;  %511 = vmatprep.subr.bf16.mxu1 %v534_v7 }
   0xf   :  { %186 = vmatpush1.bf16.msra.mxu0 %v536_v8  ;;  %519 = vmatpush1.bf16.msra.mxu1 %v536_v8 }
  0x10   :  { %187 = vmatprep.subr.bf16.mxu0 %v537_v9  ;;  %512 = vmatprep.subr.bf16.mxu1 %v537_v9 }
  0x13   :  { %188 = vmatpush1.bf16.msra.mxu0 %v539_v10  ;;  %520 = vmatpush1.bf16.msra.mxu1 %v539_v10 }
  0x14   :  { %189 = vmatprep.subr.bf16.mxu0 %v540_v11  ;;  %513 = vmatprep.subr.bf16.mxu1 %v540_v11 }
  0x17   :  { %190 = vmatpush1.bf16.msra.mxu0 %v542_v12  ;;  %521 = vmatpush1.bf16.msra.mxu1 %v542_v12 }
  0x18   :  { %191 = vmatprep.subr.bf16.mxu0 %v543_v13  ;;  %514 = vmatprep.subr.bf16.mxu1 %v543_v13 }
  0x1b   :  { %192 = vmatpush1.bf16.msra.mxu0 %v545_v14  ;;  %522 = vmatpush1.bf16.msra.mxu1 %v545_v14 }
  0x1c   :  { %193 = vmatprep.subr.bf16.mxu0 %v546_v15  ;;  %515 = vmatprep.subr.bf16.mxu1 %v546_v15 }
  0x1f   :  { %194 = vmatpush1.bf16.msra.mxu0 %v548_v16  ;;  %523 = vmatpush1.bf16.msra.mxu1 %v548_v16 }
  0x22   :  { %212 = vmatmul.mubr.bf16.vlgmr.msra.gmra.mxu0 %v549_v17  ;;  %232 = vmatmul.mubr.bf16.vlgmr.msra.gmra.mxu1 %v550_v18 }
  0x23   :  { %221 = vmatprep.mubr.bf16.mxu0 %v617_v1  ;;  %241 = vmatprep.mubr.bf16.mxu1 %v617_v1 }
  0x2a   :  { %222 = vmatmul.mubr.bf16.gmra.mxu0 %v551_v19  ;;  %242 = vmatmul.mubr.bf16.gmra.mxu1 %v552_v20 }
  0xe2   :  { %v213_v28 = vpop.f32.mrf.mxu0  ;;  %v233_v29 = vpop.f32.mrf.mxu1 }
  0xe3   :  { %v702_v30 = vadd.f32 %v308_v26, %v213_v28  ;;  %v704_v31 = vadd.f32 %v308_v26, %v233_v29  ;;  %v751_v29 = vand.u32 127, %v305_v21 }
  0xe4   :  { %v215_v32 = vpop.f32.mrf.mxu0  ;;  %v235_v33 = vpop.f32.mrf.mxu1 }
  0xe5   :  { %v492_v34 = vmul.f32 -1.442695, %v702_v30  ;;  %v500_v35 = vmul.f32 -1.442695, %v704_v31  ;;  %v708_v36 = vadd.f32 %v312_v27, %v215_v32  ;;  %v710_v37 = vadd.f32 %v312_v27, %v235_v33 }
  0xe6   :  { %v217_v38 = vpop.f32.mrf.mxu0  ;;  %v237_v39 = vpop.f32.mrf.mxu1  ;;  %vm334_vm0 = vcmp.ge.s32.totalorder %v751_v29, 14 }
  0xe7   :  { %553 = vpow2.f32 %v492_v34  ;;  %v493_v40 = vmul.f32 -1.442695, %v708_v36  ;;  %v501_v41 = vmul.f32 -1.442695, %v710_v37  ;;  %v714_v42 = vadd.f32 %v308_v26, %v217_v38 }
  0xe8   :  { %555 = vpow2.f32 %v500_v35  ;;  %v716_v43 = vadd.f32 %v308_v26, %v237_v39  ;;  %v219_v44 = vpop.f32.mrf.mxu0  ;;  %v239_v45 = vpop.f32.mrf.mxu1 }
  0xe9   :  { %557 = vpow2.f32 %v493_v40  ;;  %v494_v46 = vmul.f32 -1.442695, %v714_v42  ;;  %v719_v47 = vadd.f32 %v312_v27, %v219_v44  ;;  %v721_v48 = vadd.f32 %v312_v27, %v239_v45 }
  0xea   :  { %559 = vpow2.f32 %v501_v41  ;;  %v502_v49 = vmul.f32 -1.442695, %v716_v43  ;;  %v223_v50 = vpop.f32.mrf.mxu0  ;;  %v243_v51 = vpop.f32.mrf.mxu1  ;;  %v754_v44 = vadd.s32 128, %v751_v29 }
  0xeb   :  { %561 = vpow2.f32 %v494_v46  ;;  %v495_v52 = vmul.f32 -1.442695, %v719_v47  ;;  %v503_v53 = vmul.f32 -1.442695, %v721_v48  ;;  %v726_v54 = vadd.f32 %v308_v26, %v223_v50 }
  0xec   :  { %563 = vpow2.f32 %v502_v49  ;;  %v728_v55 = vadd.f32 %v308_v26, %v243_v51  ;;  %v225_v56 = vpop.f32.mrf.mxu0  ;;  %v245_v57 = vpop.f32.mrf.mxu1  ;;  %vm337_vm1 = vcmp.lt.s32.totalorder %v754_v44, 142 }
  0xed   :  { %565 = vpow2.f32 %v495_v52  ;;  %v496_v58 = vmul.f32 -1.442695, %v726_v54  ;;  %v731_v59 = vadd.f32 %v312_v27, %v225_v56  ;;  %v733_v60 = vadd.f32 %v312_v27, %v245_v57 }
  0xee   :  { %567 = vpow2.f32 %v503_v53  ;;  %v504_v61 = vmul.f32 -1.442695, %v728_v55  ;;  %v227_v62 = vpop.f32.mrf.mxu0  ;;  %v247_v63 = vpop.f32.mrf.mxu1 }
  0xef   :  { %569 = vpow2.f32 %v496_v58  ;;  %v497_v0 = vmul.f32 -1.442695, %v731_v59  ;;  %v505_v1 = vmul.f32 -1.442695, %v733_v60  ;;  %v738_v2 = vadd.f32 %v308_v26, %v227_v62 }
  0xf0   :  { %571 = vpow2.f32 %v504_v61  ;;  %v740_v3 = vadd.f32 %v308_v26, %v247_v63  ;;  %v229_v4 = vpop.f32.mrf.mxu0  ;;  %v249_v5 = vpop.f32.mrf.mxu1 }
  0xf1   :  { %573 = vpow2.f32 %v497_v0  ;;  %v498_v6 = vmul.f32 -1.442695, %v738_v2  ;;  %v743_v7 = vadd.f32 %v312_v27, %v229_v4  ;;  %v745_v8 = vadd.f32 %v312_v27, %v249_v5 }
  0xf2   :  { %575 = vpow2.f32 %v505_v1  ;;  %v506_v9 = vmul.f32 -1.442695, %v740_v3 }
  0xf3   :  { %577 = vpow2.f32 %v498_v6  ;;  %v499_v10 = vmul.f32 -1.442695, %v743_v7  ;;  %v507_v11 = vmul.f32 -1.442695, %v745_v8 }
  0xf4   :  { %v554_v12 = vpop.eup %553  ;;  %579 = vpow2.f32 %v506_v9 }
  0xf5   :  { %v556_v13 = vpop.eup %555  ;;  %v388_v14 = vadd.f32 1.0, %v554_v12  ;;  %581 = vpow2.f32 %v499_v10 }
  0xf6   :  { %v558_v15 = vpop.eup %557  ;;  %v396_v16 = vadd.f32 1.0, %v556_v13  ;;  %583 = vpow2.f32 %v507_v11 }
  0xf7   :  { %v560_v17 = vpop.eup %559  ;;  %585 = vrcp.f32 %v388_v14  ;;  %v389_v18 = vadd.f32 1.0, %v558_v15 }
  0xf8   :  { %v562_v19 = vpop.eup %561  ;;  %587 = vrcp.f32 %v396_v16  ;;  %v397_v20 = vadd.f32 1.0, %v560_v17 }
  0xf9   :  { %v564_v22 = vpop.eup %563  ;;  %589 = vrcp.f32 %v389_v18  ;;  %v390_v23 = vadd.f32 1.0, %v562_v19 }
  0xfa   :  { %v566_v24 = vpop.eup %565  ;;  %591 = vrcp.f32 %v397_v20  ;;  %v398_v25 = vadd.f32 1.0, %v564_v22 }
  0xfb   :  { %v568_v26 = vpop.eup %567  ;;  %593 = vrcp.f32 %v390_v23  ;;  %v391_v27 = vadd.f32 1.0, %v566_v24 }
  0xfc   :  { %v570_v28 = vpop.eup %569  ;;  %595 = vrcp.f32 %v398_v25  ;;  %v399_v32 = vadd.f32 1.0, %v568_v26 }
  0xfd   :  { %v572_v33 = vpop.eup %571  ;;  %597 = vrcp.f32 %v391_v27  ;;  %v392_v34 = vadd.f32 1.0, %v570_v28 }
  0xfe   :  { %v574_v35 = vpop.eup %573  ;;  %599 = vrcp.f32 %v399_v32  ;;  %v400_v38 = vadd.f32 1.0, %v572_v33 }
  0xff   :  { %v576_v39 = vpop.eup %575  ;;  %601 = vrcp.f32 %v392_v34  ;;  %v393_v40 = vadd.f32 1.0, %v574_v35 }
 0x100   :  { %v578_v41 = vpop.eup %577  ;;  %603 = vrcp.f32 %v400_v38  ;;  %v401_v45 = vadd.f32 1.0, %v576_v39 }
 0x101   :  { %v580_v46 = vpop.eup %579  ;;  %605 = vrcp.f32 %v393_v40  ;;  %v394_v21 = vadd.f32 1.0, %v578_v41 }
 0x102   :  { %v582_v49 = vpop.eup %581  ;;  %607 = vrcp.f32 %v401_v45  ;;  %v402_v50 = vadd.f32 1.0, %v580_v46 }
 0x103   :  { %v584_v51 = vpop.eup %583  ;;  %609 = vrcp.f32 %v394_v21  ;;  %v395_v52 = vadd.f32 1.0, %v582_v49 }
 0x104   :  { %v586_v53 = vpop.eup %585  ;;  %611 = vrcp.f32 %v402_v50  ;;  %v403_v56 = vadd.f32 1.0, %v584_v51 }
 0x105   :  { %v588_v57 = vpop.eup %587  ;;  %v436_v58 = vsel %vm334_vm0, %v586_v53, %v702_v30  ;;  %613 = vrcp.f32 %v395_v52 }
 0x106   :  { %v590_v61 = vpop.eup %589  ;;  %452 = vst [vmem:[%s857_s3] sm:$0xff] %v436_v58  ;;  %v444_v62 = vsel %vm334_vm0, %v588_v57, %v704_v31  ;;  %615 = vrcp.f32 %v403_v56 }
 0x107   :  { %v592_v63 = vpop.eup %591  ;;  %460 = vst [vmem:[%s857_s3 + $0x40] sm:$0xff] %v444_v62  ;;  %v437_v30 = vsel %vm337_vm1, %v590_v61, %v708_v36 }
 0x108   :  { %v594_v0 = vpop.eup %593  ;;  %453 = vst [vmem:[%s857_s3 + $0x8] sm:$0xff] %v437_v30  ;;  %v445_v1 = vsel %vm337_vm1, %v592_v63, %v710_v37 }
 0x109   :  { %v596_v31 = vpop.eup %595  ;;  %461 = vst [vmem:[%s857_s3 + $0x48] sm:$0xff] %v445_v1  ;;  %v438_v4 = vsel %vm334_vm0, %v594_v0, %v714_v42 }
 0x10a   :  { %v598_v5 = vpop.eup %597  ;;  %454 = vst [vmem:[%s857_s3 + $0x10] sm:$0xff] %v438_v4  ;;  %v446_v36 = vsel %vm334_vm0, %v596_v31, %v716_v43 }
 0x10b   :  { %v600_v6 = vpop.eup %599  ;;  %462 = vst [vmem:[%s857_s3 + $0x50] sm:$0xff] %v446_v36  ;;  %v439_v37 = vsel %vm337_vm1, %v598_v5, %v719_v47 }
 0x10c   :  { %v602_v9 = vpop.eup %601  ;;  %455 = vst [vmem:[%s857_s3 + $0x18] sm:$0xff] %v439_v37  ;;  %v447_v42 = vsel %vm337_vm1, %v600_v6, %v721_v48 }
 0x10d   :  { %v604_v10 = vpop.eup %603  ;;  %463 = vst [vmem:[%s857_s3 + $0x58] sm:$0xff] %v447_v42  ;;  %v440_v43 = vsel %vm334_vm0, %v602_v9, %v726_v54 }
 0x10e   :  { %v606_v11 = vpop.eup %605  ;;  %456 = vst [vmem:[%s857_s3 + $0x20] sm:$0xff] %v440_v43  ;;  %v448_v47 = vsel %vm334_vm0, %v604_v10, %v728_v55 }
 0x10f   :  { %v608_v12 = vpop.eup %607  ;;  %464 = vst [vmem:[%s857_s3 + $0x60] sm:$0xff] %v448_v47  ;;  %v441_v48 = vsel %vm337_vm1, %v606_v11, %v731_v59 }
 0x110   :  { %v610_v13 = vpop.eup %609  ;;  %457 = vst [vmem:[%s857_s3 + $0x28] sm:$0xff] %v441_v48  ;;  %v449_v54 = vsel %vm337_vm1, %v608_v12, %v733_v60 }
 0x111   :  { %v612_v14 = vpop.eup %611  ;;  %465 = vst [vmem:[%s857_s3 + $0x68] sm:$0xff] %v449_v54  ;;  %v442_v55 = vsel %vm334_vm0, %v610_v13, %v738_v2 }
 0x112   :  { %v614_v15 = vpop.eup %613  ;;  %458 = vst [vmem:[%s857_s3 + $0x30] sm:$0xff] %v442_v55  ;;  %v450_v59 = vsel %vm334_vm0, %v612_v14, %v740_v3 }
 0x113   :  { %v616_v16 = vpop.eup %615  ;;  %466 = vst [vmem:[%s857_s3 + $0x70] sm:$0xff] %v450_v59  ;;  %v443_v60 = vsel %vm337_vm1, %v614_v15, %v743_v7 }
 0x114   :  { %459 = vst [vmem:[%s857_s3 + $0x38] sm:$0xff] %v443_v60  ;;  %v451_v2 = vsel %vm337_vm1, %v616_v16, %v745_v8 }
 0x115   :  { %467 = vst [vmem:[%s857_s3 + $0x78] sm:$0xff] %v451_v2 }

</bundles_post_ra>
